<compile_context>
chip_gen: v7x
topology: tpu7x:2x2x1
jax: 0.10.0
libtpu: 0.0.40
codegen_flags: <defaults>
</compile_context>

<pallas_src>
import math

import jax
import jax.numpy as jnp
from jax.experimental import pallas as pl
from jax.experimental.pallas import tpu as pltpu

BN_EPS = 1e-5
PLANES = 256
NUM_BRANCHES = 4          # aspp1..aspp4 (the global-pool branch is folded into the epilogue)


# ----------------------------- fused Pallas kernel ----------------------------- #

def _aspp_fused_kernel(lhs_ref, wbr_ref, bbr_ref, wc1_ref, epi_ref, o_ref):
    """One grid step == one (image, row-tile) of TM output pixels.

    lhs_ref : (TM, K_pack)          bf16  tap-packed input rows (all four branches)
    wbr_ref : (K_pack, 4*planes)    bf16  block-diagonal branch weights (BN scale folded)
    bbr_ref : (1, 4*planes)         f32   per-branch BN biases tiled along columns
    wc1_ref : (4*planes, planes)    bf16  conv1 rows for branches 1..4 (bn1 scale folded)
    epi_ref : (1, planes)           f32   pooled-branch conv1 contribution + bn1 bias
    o_ref   : (TM, planes)          f32   output rows
    """
    # All four atrous branches in ONE MXU dot: tap & Cin accumulation stays in the MXU,
    # no per-tap f32 accumulator round-tripping VMEM.
    h = jnp.dot(lhs_ref[...], wbr_ref[...], preferred_element_type=jnp.float32)
    # BN bias + ReLU per branch column block; single bf16 cast feeding conv1.
    h = jnp.maximum(h + bbr_ref[...], 0.0).astype(jnp.bfloat16)
    # conv1 over the (never HBM-materialized) channel concat: one K = 4*planes MXU dot.
    out = jnp.dot(h, wc1_ref[...], preferred_element_type=jnp.float32)
    # + pooled-branch contribution + bn1 bias, final ReLU.  Dropout == identity (eval).
    o_ref[...] = jnp.maximum(out + epi_ref[...], 0.0).astype(o_ref.dtype)


# --------------------------------- forward pass -------------------------------- #

def _active_taps(d, h, w):
    """3x3 taps whose dilated window intersects the image; the rest see only zero padding
    (exactly-zero contribution, dropped statically).  Valid because the BN bias is added
    after the tap sum."""
    return [(dy, dx) for dy in (-1, 0, 1) for dx in (-1, 0, 1)
            if (dy == 0 or d < h) and (dx == 0 or d < w)]


def aspp_forward(x_nchw, params, dilations=(1, 6, 12, 18)):
    """ASPP forward. x_nchw: (N, Cin, H, W) f32 -> (N, 256, H, W) f32."""
    assert dilations[0] == 1, "aspp1 is a 1x1 conv (padding dilations[0]-1 == 0)"
    N, Cin, H, W = x_nchw.shape
    planes = PLANES
    x = jnp.transpose(x_nchw, (0, 2, 3, 1)).astype(jnp.float32)          # NHWC

    # ---- static tap plan: branch 0 is the 1x1 conv, branches 1..3 the dilated 3x3 convs.
    branch_dil = (1,) + tuple(dilations[1:])
    branch_taps = [[(0, 0)]] + [_active_taps(d, H, W) for d in dilations[1:]]
    # pad only by the largest dilation whose off-centre taps are actually used (12 here,
    # not 18): the d>=H/W branches keep only their centre tap.
    pad = max([d for d, t in zip(branch_dil, branch_taps) if len(t) > 1] + [0])
    xp = jnp.pad(x, ((0, 0), (pad, pad), (pad, pad), (0, 0))) if pad else x

    # ---- wrapper-side tap packing (layout plumbing only; all FLOPs stay in the kernel).
    # For tiny Cin this makes the kernel LHS lane-dense and lets every tap accumulate
    # inside the MXU instead of through VPU adds + VMEM round trips.
    cols, w_blocks = [], []
    for bi, (d, taps) in enumerate(zip(branch_dil, branch_taps)):
        for (dy, dx) in taps:
            y0, x0 = pad + dy * d, pad + dx * d
            cols.append(xp[:, y0:y0 + H, x0:x0 + W, :])                  # (N, H, W, Cin)
        if bi == 0:
            w_blocks.append(params["w_aspp1"])                           # (Cin, planes)
        else:
            w9 = params["w_aspp234"][bi - 1]                             # (9, Cin, planes)
            w_blocks.append(jnp.concatenate(
                [w9[(dy + 1) * 3 + (dx + 1)] for (dy, dx) in taps], axis=0))

    k_pack = Cin * sum(len(t) for t in branch_taps)                      # 80 at this shape
    lhs = jnp.concatenate(cols, axis=-1).reshape(N, H * W, k_pack).astype(jnp.bfloat16)

    # block-diagonal branch weight (k_pack, 4*planes); the structural zeros are ~free MXU
    # work at this size and disappear if per-branch dots are used for large Cin.
    w_branch = jnp.zeros((k_pack, NUM_BRANCHES * planes), jnp.float32)
    row = 0
    for bi, wb in enumerate(w_blocks):
        w_branch = w_branch.at[row:row + wb.shape[0],
                               bi * planes:(bi + 1) * planes].set(wb.astype(jnp.float32))
        row += wb.shape[0]
    w_branch = w_branch.astype(jnp.bfloat16)

    bias_branch = params["biases"][:NUM_BRANCHES].reshape(1, NUM_BRANCHES * planes)
    w_conv1 = params["w_conv1"][:NUM_BRANCHES * planes]                  # (1024, 256) bf16

    # ---- global_avg_pool branch in plain jnp: a (N, Cin)@(Cin, 256) matmul with N~2 is
    # pure launch overhead as a dedicated pallas_call.  Its conv1 contribution is a single
    # per-image row, broadcast-added in the kernel epilogue (bn1 bias folded in as well).
    pooled = jnp.mean(x, axis=(1, 2))                                    # (N, Cin)
    x5 = jnp.maximum(
        jnp.dot(pooled.astype(jnp.bfloat16), params["w_pool"],
                preferred_element_type=jnp.float32) + params["bias_pool"][None, :], 0.0)
    x5_contrib = jnp.dot(x5.astype(jnp.bfloat16),
                         params["w_conv1"][NUM_BRANCHES * planes:],
                         preferred_element_type=jnp.float32)             # (N, planes)
    epi = (x5_contrib + params["biases"][NUM_BRANCHES][None, :]).reshape(N, 1, planes)

    # ---- fused kernel: grid = (image, row-tile), both "parallel" so v7x's two TensorCores
    # are load-balanced regardless of batch size and the pipeline has >1 step per image.
    tm = 128 if (H * W) % 128 == 0 else H * W                            # keep M a 128-multiple
    grid = (N, (H * W) // tm)

    # Per-step VMEM (double-buffered) is < 3 MiB here -- far below every chip's default
    # scoped limit, so no vmem_limit_bytes override is needed at this shape.
    out = pl.pallas_call(
        _aspp_fused_kernel,
        out_shape=jax.ShapeDtypeStruct((N, H * W, planes), jnp.float32),
        grid=grid,
        in_specs=[
            pl.BlockSpec((None, tm, k_pack), lambda n, m: (n, m, 0)),            # packed LHS
            pl.BlockSpec((k_pack, NUM_BRANCHES * planes), lambda n, m: (0, 0)),  # branch W
            pl.BlockSpec((1, NUM_BRANCHES * planes), lambda n, m: (0, 0)),       # branch biases
            pl.BlockSpec((NUM_BRANCHES * planes, planes), lambda n, m: (0, 0)),  # conv1 W
            pl.BlockSpec((None, 1, planes), lambda n, m: (n, 0, 0)),             # epilogue row
        ],
        out_specs=pl.BlockSpec((None, tm, planes), lambda n, m: (n, m, 0)),
        compiler_params=pltpu.CompilerParams(
            dimension_semantics=("parallel", "parallel")),
    )(lhs, w_branch, bias_branch, w_conv1, epi)

    out = out.reshape(N, H, W, planes)
    return jnp.transpose(out, (0, 3, 1, 2))                              # back to NCHW


# ------------------------------- parameter init -------------------------------- #

def kaiming_conv_weight(key, cout, cin, kh, kw):
    """PyTorch kaiming_normal_ (fan_in, gain=sqrt(2)) on a (Cout,Cin,kh,kw) weight, returned
    as a (kh*kw*Cin, Cout) matmul weight with (dy, dx, cin) row order (matches the tap-packed
    LHS column order and the conv1 channel-concat order)."""
    fan_in = cin * kh * kw
    std = math.sqrt(2.0 / fan_in)
    w = jax.random.normal(key, (cout, cin, kh, kw), dtype=jnp.float32) * std
    return jnp.transpose(w, (2, 3, 1, 0)).reshape(kh * kw * cin, cout)


def init_aspp_params(key, inplanes):
    planes = PLANES
    keys = jax.random.split(key, 6)
    # fresh-init inference BatchNorm: y = x / sqrt(1 + eps); fold the scale into the conv
    # weight columns, keep the (zero) biases as explicit inputs for generality.
    bn_scale = 1.0 / math.sqrt(1.0 + BN_EPS)

    w1 = kaiming_conv_weight(keys[0], planes, inplanes, 1, 1) * bn_scale
    w2 = kaiming_conv_weight(keys[1], planes, inplanes, 3, 3) * bn_scale
    w3 = kaiming_conv_weight(keys[2], planes, inplanes, 3, 3) * bn_scale
    w4 = kaiming_conv_weight(keys[3], planes, inplanes, 3, 3) * bn_scale
    w_pool = kaiming_conv_weight(keys[4], planes, inplanes, 1, 1) * bn_scale
    w_conv1 = kaiming_conv_weight(keys[5], planes, 5 * planes, 1, 1) * bn_scale  # bn1 folded

    w234 = jnp.stack([w2.reshape(9, inplanes, planes),
                      w3.reshape(9, inplanes, planes),
                      w4.reshape(9, inplanes, planes)], axis=0)

    return {
        "w_aspp1": w1.astype(jnp.bfloat16),
        "w_aspp234": w234.astype(jnp.bfloat16),
        "w_pool": w_pool.astype(jnp.bfloat16),
        "w_conv1": w_conv1.astype(jnp.bfloat16),
        # rows 0..3: aspp1..aspp4 BN biases, row 4: bn1 bias, rows 5..7: padding.
        "biases": jnp.zeros((8, planes), jnp.float32),
        "bias_pool": jnp.zeros((planes,), jnp.float32),
    }


# ------------------------ pure-XLA reference (for checking) --------------------- #

def aspp_reference(x_nchw, params, dilations=(1, 6, 12, 18)):
    """Reference mirrors the kernel's bias handling so the check stays meaningful even for
    non-zero BN biases (module init uses zeros)."""
    N, Cin, H, W = x_nchw.shape
    planes = PLANES
    x = jnp.transpose(x_nchw, (0, 2, 3, 1)).astype(jnp.float32)

    def conv(inp, w_mat, kh, kw, d):
        w = w_mat.astype(jnp.float32).reshape(kh, kw, inp.shape[-1], planes)
        ph, pw = d * (kh // 2), d * (kw // 2)
        return jax.lax.conv_general_dilated(
            inp, w, window_strides=(1, 1), padding=[(ph, ph), (pw, pw)],
            rhs_dilation=(d, d), dimension_numbers=("NHWC", "HWIO", "NHWC"))

    relu = lambda v: jnp.maximum(v, 0.0)
    bz = params["biases"]
    w234 = params["w_aspp234"]
    b1 = relu(conv(x, params["w_aspp1"], 1, 1, 1) + bz[0])
    b2 = relu(conv(x, w234[0].reshape(9 * Cin, planes), 3, 3, dilations[1]) + bz[1])
    b3 = relu(conv(x, w234[1].reshape(9 * Cin, planes), 3, 3, dilations[2]) + bz[2])
    b4 = relu(conv(x, w234[2].reshape(9 * Cin, planes), 3, 3, dilations[3]) + bz[3])
    pooled = jnp.mean(x, axis=(1, 2), keepdims=True)
    b5 = jnp.broadcast_to(relu(conv(pooled, params["w_pool"], 1, 1, 1)
                               + params["bias_pool"]), (N, H, W, planes))
    cat = jnp.concatenate([b1, b2, b3, b4, b5], axis=-1)
    out = relu(conv(cat, params["w_conv1"], 1, 1, 1) + bz[4])
    return jnp.transpose(out, (0, 3, 1, 2))


# ------------------------------------ main -------------------------------------- #

if __name__ == "__main__":
    key = jax.random.PRNGKey(0)
    k_x, k_p, k_b = jax.random.split(key, 3)

    N, Cin, H, W = 2, 4, 16, 16
    x = jax.random.normal(k_x, (N, Cin, H, W), dtype=jnp.float32)
    params = init_aspp_params(k_p, Cin)

    fwd = jax.jit(aspp_forward)
    y = jax.block_until_ready(fwd(x, params))

    assert y.shape == (N, PLANES, H, W), y.shape
    assert bool(jnp.all(jnp.isfinite(y)))
    assert bool(jnp.all(y >= 0.0))            # final ReLU

    # numerical check vs. a pure-XLA f32 reference (kernel uses bf16 MXU operands).
    y_ref = jax.block_until_ready(aspp_reference(x, params))
    abs_err = float(jnp.max(jnp.abs(y - y_ref)))
    rel_err = abs_err / (float(jnp.max(jnp.abs(y_ref))) + 1e-6)
    assert abs_err < 0.1 and rel_err < 0.03, (abs_err, rel_err)

    # generality check with non-zero BN biases (exercises the bias paths end-to-end).
    kb1, kb2 = jax.random.split(k_b)
    params_b = dict(params)
    params_b["biases"] = params["biases"].at[:5].set(
        0.1 * jax.random.normal(kb1, (5, PLANES), dtype=jnp.float32))
    params_b["bias_pool"] = 0.1 * jax.random.normal(kb2, (PLANES,), dtype=jnp.float32)
    y2 = jax.block_until_ready(fwd(x, params_b))
    y2_ref = aspp_reference(x, params_b)
    abs_err2 = float(jnp.max(jnp.abs(y2 - y2_ref)))
    rel_err2 = abs_err2 / (float(jnp.max(jnp.abs(y2_ref))) + 1e-6)
    assert abs_err2 < 0.1 and rel_err2 < 0.03, (abs_err2, rel_err2)

    print("KERNEL_OK")
</pallas_src>

<mosaic_0001>
module attributes {stable_mosaic.version = 11 : i64} {
  func.func @_aspp_fused_kernel(%arg0: i32, %arg1: i32, %arg2: memref<1x128x80xbf16, #tpu.memory_space<vmem>>, %arg3: memref<80x1024xbf16, #tpu.memory_space<vmem>>, %arg4: memref<1x1024xf32, #tpu.memory_space<vmem>>, %arg5: memref<1024x256xbf16, #tpu.memory_space<vmem>>, %arg6: memref<1x1x256xf32, #tpu.memory_space<vmem>>, %arg7: memref<1x128x256xf32, #tpu.memory_space<vmem>>) attributes {dimension_semantics = [#tpu.dimension_semantics<parallel>, #tpu.dimension_semantics<parallel>], iteration_bounds = array<i64: 2, 2>, scalar_prefetch = 0 : i64, scratch_operands = 0 : i64, tpu.core_type = #tpu.core_type<tc>, window_params = [{transform_indices = @transform_0, window_bounds = array<i64: 1, 128, 80>}, {pipeline_mode = #tpu.pipeline_mode<synchronous>, transform_indices = @transform_1, window_bounds = array<i64: 80, 1024>}, {pipeline_mode = #tpu.pipeline_mode<synchronous>, transform_indices = @transform_2, window_bounds = array<i64: 1, 1024>}, {pipeline_mode = #tpu.pipeline_mode<synchronous>, transform_indices = @transform_3, window_bounds = array<i64: 1024, 256>}, {transform_indices = @transform_4, window_bounds = array<i64: 1, 1, 256>}, {transform_indices = @transform_5, window_bounds = array<i64: 1, 128, 256>}]} {
    %c0 = arith.constant 0 : index
    %c0_0 = arith.constant 0 : index
    %c0_1 = arith.constant 0 : index
    %0 = vector.load %arg2[%c0, %c0_0, %c0_1] : memref<1x128x80xbf16, #tpu.memory_space<vmem>>, vector<1x128x80xbf16>
    %1 = vector.shape_cast %0 : vector<1x128x80xbf16> to vector<128x80xbf16>
    %c0_2 = arith.constant 0 : index
    %c0_3 = arith.constant 0 : index
    %2 = vector.load %arg3[%c0_2, %c0_3] : memref<80x1024xbf16, #tpu.memory_space<vmem>>, vector<80x1024xbf16>
    %cst = arith.constant dense<0.000000e+00> : vector<128x1024xf32>
    %3 = tpu.matmul %1, %2, %cst {dimension_numbers = #tpu.dot_dimension_numbers<[1], [0], [0], [1], [0, 0, 1, 1], [], []>} : vector<128x80xbf16>, vector<80x1024xbf16>, vector<128x1024xf32> -> vector<128x1024xf32>
    %c0_4 = arith.constant 0 : index
    %c0_5 = arith.constant 0 : index
    %4 = vector.load %arg4[%c0_4, %c0_5] : memref<1x1024xf32, #tpu.memory_space<vmem>>, vector<1x1024xf32>
    %5 = vector.broadcast %4 : vector<1x1024xf32> to vector<128x1024xf32>
    %6 = arith.addf %3, %5 : vector<128x1024xf32>
    %cst_6 = arith.constant 0.000000e+00 : f32
    %7 = vector.broadcast %cst_6 : f32 to vector<128x1024xf32>
    %8 = arith.maximumf %6, %7 : vector<128x1024xf32>
    %9 = arith.truncf %8 : vector<128x1024xf32> to vector<128x1024xbf16>
    %c0_7 = arith.constant 0 : index
    %c0_8 = arith.constant 0 : index
    %10 = vector.load %arg5[%c0_7, %c0_8] : memref<1024x256xbf16, #tpu.memory_space<vmem>>, vector<1024x256xbf16>
    %cst_9 = arith.constant dense<0.000000e+00> : vector<128x256xf32>
    %11 = tpu.matmul %9, %10, %cst_9 {dimension_numbers = #tpu.dot_dimension_numbers<[1], [0], [0], [1], [0, 0, 1, 1], [], []>} : vector<128x1024xbf16>, vector<1024x256xbf16>, vector<128x256xf32> -> vector<128x256xf32>
    %c0_10 = arith.constant 0 : index
    %c0_11 = arith.constant 0 : index
    %c0_12 = arith.constant 0 : index
    %12 = vector.load %arg6[%c0_10, %c0_11, %c0_12] : memref<1x1x256xf32, #tpu.memory_space<vmem>>, vector<1x1x256xf32>
    %13 = vector.shape_cast %12 : vector<1x1x256xf32> to vector<1x256xf32>
    %14 = vector.broadcast %13 : vector<1x256xf32> to vector<128x256xf32>
    %15 = arith.addf %11, %14 : vector<128x256xf32>
    %cst_13 = arith.constant 0.000000e+00 : f32
    %16 = vector.broadcast %cst_13 : f32 to vector<128x256xf32>
    %17 = arith.maximumf %15, %16 : vector<128x256xf32>
    %c0_14 = arith.constant 0 : index
    %c0_15 = arith.constant 0 : index
    %c0_16 = arith.constant 0 : index
    %18 = vector.load %arg7[%c0_14, %c0_15, %c0_16] : memref<1x128x256xf32, #tpu.memory_space<vmem>>, vector<1x128x256xf32>
    %19 = vector.shape_cast %18 : vector<1x128x256xf32> to vector<128x256xf32>
    %20 = vector.shape_cast %17 : vector<128x256xf32> to vector<1x128x256xf32>
    tpu.vector_store %arg7[%c0_14, %c0_15, %c0_16], %20 {strides = array<i32>} : memref<1x128x256xf32, #tpu.memory_space<vmem>>, vector<1x128x256xf32>,
    return
  }
  func.func @transform_0(%arg0: i32, %arg1: i32) -> (i32, i32, i32) {
    %c0_i32 = arith.constant 0 : i32
    %c0_i32_0 = arith.constant 0 : i32
    return %arg0, %arg1, %c0_i32 : i32, i32, i32
  }
  func.func @transform_1(%arg0: i32, %arg1: i32) -> (i32, i32) {
    %c0_i32 = arith.constant 0 : i32
    %c0_i32_0 = arith.constant 0 : i32
    %c0_i32_1 = arith.constant 0 : i32
    return %c0_i32, %c0_i32_0 : i32, i32
  }
  func.func @transform_2(%arg0: i32, %arg1: i32) -> (i32, i32) {
    %c0_i32 = arith.constant 0 : i32
    %c0_i32_0 = arith.constant 0 : i32
    %c0_i32_1 = arith.constant 0 : i32
    return %c0_i32, %c0_i32_0 : i32, i32
  }
  func.func @transform_3(%arg0: i32, %arg1: i32) -> (i32, i32) {
    %c0_i32 = arith.constant 0 : i32
    %c0_i32_0 = arith.constant 0 : i32
    %c0_i32_1 = arith.constant 0 : i32
    return %c0_i32, %c0_i32_0 : i32, i32
  }
  func.func @transform_4(%arg0: i32, %arg1: i32) -> (i32, i32, i32) {
    %c0_i32 = arith.constant 0 : i32
    %c0_i32_0 = arith.constant 0 : i32
    %c0_i32_1 = arith.constant 0 : i32
    return %arg0, %c0_i32, %c0_i32_0 : i32, i32, i32
  }
  func.func @transform_5(%arg0: i32, %arg1: i32) -> (i32, i32, i32) {
    %c0_i32 = arith.constant 0 : i32
    %c0_i32_0 = arith.constant 0 : i32
    return %arg0, %arg1, %c0_i32 : i32, i32, i32
  }
}

</mosaic_0001>

<bundles_post_ra>
// kernel: aspp_forward.1
= control target key start
LH: loop header
LB: loop body
LE: loop exit
PB: predicated region body
PF: predicated region fallthrough
CT: control target
= control target key end

     0   :  { %10 = vsyncpa [#allocation3], 0  ;;  %s4631_s0 = inlined_call_operand.vmem [shape: bf16[2,256,80], index: 0, kind: input, shape index: {}]   ;;  %s4632_s1 = inlined_call_operand.vmem [shape: bf16[80,1024], index: 1, kind: input, shape index: {}]   ;;  %s4633_s2 = inlined_call_operand.vmem [shape: f32[1,1024], index: 2, kind: input, shape index: {}]   ;;  %s4634_s3 = inlined_call_operand.vmem [shape: bf16[1024,256], index: 3, kind: input, shape index: {}]   ;;  %s4635_s4 = inlined_call_operand.vmem [shape: f32[2,1,256], index: 4, kind: input, shape index: {}]   ;;  %s4636_s5 = inlined_call_operand.hbm [shape: f32[2,256,256], index: 5, kind: output, shape index: {}]  }
   0x1   :  { %12 = vsyncpa [#allocation3 + $0x1], 0  ;;  %s3444_s18 = smov 0   ;;  %s3446_s19 = smov 0  }
   0x2   :  { %s3448_s20 = smov 0   ;;  %s3450_s21 = smov 0  }
   0x3   :  { %s3452_s22 = smov 0   ;;  %s3454_s23 = smov 0  }
   0x4   :  { %s3456_s24 = smov 0   ;;  %s3458_s25 = smov 0  }
   0x5 LB: > { %4640 = sst [smem:[#allocation5_spill]] %s3404_s24  ;;  %s2686_s26 = sadd.s32 4294967295, %s3408_s25   ;;  %s3408_s25 = sphi %s3458_s25, %s18_s25   ;;  %s3404_s24 = sphi %s3456_s24, %s4647_s24   ;;  %s3400_s23 = sphi %s3454_s23, %s4652_s23   ;;  %s3396_s22 = sphi %s3452_s22, %s4645_s22   ;;  %s3392_s21 = sphi %s3450_s21, %s4651_s21   ;;  %s3388_s20 = sphi %s3448_s20, %s4650_s20   ;;  %s3384_s19 = sphi %s3446_s19, %s4649_s19   ;;  %s3380_s18 = sphi %s3444_s18, %s4648_s18  }
   0x6   : > { %s2687_s27 = sadd.s32 4294967294, %s3408_s25   ;;  %s27_s28 = sadd.s32 1, %s3400_s23 }
   0x7   : > { %p28_p0 = scmp.ge.s32.totalorder %s27_s28, 2  ;;  %s30_s29 = sadd.s32 1, %s3404_s24 }
   0x8   : > { %p166_p1 = scmp.ne.s32.totalorder %s3388_s20, %s3384_s19  ;;  %p167_p2 = scmp.eq.s32.totalorder %s2686_s26, 3 }
   0x9   : > { %s4654_s28 = smov (%p28_p0, %s27_s28), 0  ;;  %s4656_s29 = smov (!%p28_p0, %s30_s29), %s3404_s24 }
   0xa   : > { %4641 = sst [smem:[#allocation6_spill]] %s4654_s28  ;;  %s152_s30 = ssub.s32 %s3400_s23, %s4654_s28 }
   0xb   : > { %p3495_p3 = por %p167_p2, %p166_p1  ;;  %p32_p4 = scmp.ge.s32.totalorder %s4656_s29, 2 }
   0xc   : > { %p172_p5 = scmp.ne.s32.totalorder %s3384_s19, %s3380_s18  ;;  %p173_p6 = scmp.eq.s32.totalorder %s2687_s27, 3 }
   0xd   : > { %p2690_p7 = scmp.ge.s32.totalorder %s3408_s25, 1  ;;  %s4658_s29 = smov (%p32_p4, %s4656_s29), 0 }
   0xe   : > { %4643 = sst [smem:[#allocation7_spill]] %s4658_s29  ;;  %p3504_p8 = por %p173_p6, %p172_p5 }
   0xf   : > { %p220_p9 = scmp.lt.s32.totalorder %s3408_s25, 5  ;;  %s151_s8 = ssub.s32 %s3404_s24, %s4658_s29 }
  0x10   : > { %s156_s9 = sadd.s32 1, %s3388_s20  ;;  %s153_s10 = sor.u32 %s152_s30, %s151_s8 }
  0x11   : > { %p221_p10 = pnand %p2690_p7, %p220_p9  ;;  %p154_p11 = scmp.eq.s32.totalorder %s153_s10, 0 }
  0x12   : > { %v288_v0 = vld [vmem:[%s4632_s1] sm:$0xff] (!%p221_p10)  ;;  %s2692_s26 = sshll.u32 (!%p221_p10), %s3392_s21, 4  ;;  %p257_p12 = scmp.lt.s32.totalorder (!%p221_p10), %s3396_s22, 1  ;;  %v3410_v6 = vmov (!%p221_p10), 0   ;;  %v290_v14 = vld [vmem:[%s4632_s1 + $0x10] sm:$0xff] (!%p221_p10)  ;;  %v289_v28 = vld [vmem:[%s4632_s1 + $0x8] sm:$0xff] (!%p221_p10) }
  0x13   : > { %s3513_s11 = scalar_select %p154_p11, %s3388_s20, %s156_s9  }
  0x14   : > { %224 = sbr.rel (%p221_p10) target bundleno = 747 (0x2eb), region = 40  ;;  %v292_v1 = vld [vmem:[%s4632_s1 + $0x20] sm:$0xff] (!%p221_p10)  ;;  %667 = vmatprep.mubr.bf16.mxu1 (!%p221_p10), %v3410_v6  ;;  %p259_p13 = scmp.lt.s32.totalorder (!%p221_p10), %s2692_s26, 31  ;;  %893 = vmatprep.mubr.bf16.mxu0 (!%p221_p10), %v3410_v6  ;;  %v294_v15 = vld [vmem:[%s4632_s1 + $0x30] sm:$0xff] (!%p221_p10)  ;;  %v293_v29 = vld [vmem:[%s4632_s1 + $0x28] sm:$0xff] (!%p221_p10)  ;;  %vm610_vm0 = vcmask (!%p221_p10), 654336  }
  0x15   : > { %v296_v2 = vld [vmem:[%s4632_s1 + $0x40] sm:$0xff] (!%p221_p10)  ;;  %v2705_v3 = vcombine.high (!%p221_p10), %v288_v0, %v292_v1  ;;  %v2704_v4 = vcombine.low (!%p221_p10), %v288_v0, %v292_v1  ;;  %v298_v16 = vld [vmem:[%s4632_s1 + $0x50] sm:$0xff] (!%p221_p10)  ;;  %v2709_v19 = vcombine.high (!%p221_p10), %v290_v14, %v294_v15  ;;  %v2708_v20 = vcombine.low (!%p221_p10), %v290_v14, %v294_v15  ;;  %v297_v38 = vld [vmem:[%s4632_s1 + $0x48] sm:$0xff] (!%p221_p10)  ;;  %s253_s27 = sand.u32 (!%p221_p10), 1, %s3384_s19   ;;  %s2907_s24 = sshll.u32 (!%p221_p10), %s3396_s22, 6 }
  0x16   : > { %v300_v5 = vld [vmem:[%s4632_s1 + $0x60] sm:$0xff] (!%p221_p10)  ;;  %v302_v17 = vld [vmem:[%s4632_s1 + $0x70] sm:$0xff] (!%p221_p10)  ;;  %v2707_v34 = vcombine.high (!%p221_p10), %v289_v28, %v293_v29  ;;  %v301_v39 = vld [vmem:[%s4632_s1 + $0x68] sm:$0xff] (!%p221_p10)  ;;  %v2706_v44 = vcombine.low (!%p221_p10), %v289_v28, %v293_v29  ;;  %s2691_s29 = sshll.u32 (!%p221_p10), %s253_s27, 8  ;;  %s4579_s10 = scalar_lea.sflag (!%p221_p10), [#allocation3], %s253_s27 }
  0x17   : > { %v2713_v7 = vcombine.high (!%p221_p10), %v296_v2, %v300_v5  ;;  %v304_v8 = vld [vmem:[%s4632_s1 + $0x80] sm:$0xff] (!%p221_p10)  ;;  %635 = vmatprep.subr.bf16.mxu1 (!%p221_p10), %v2705_v3  ;;  %v2712_v10 = vcombine.low (!%p221_p10), %v296_v2, %v300_v5  ;;  %v2717_v21 = vcombine.high (!%p221_p10), %v298_v16, %v302_v17  ;;  %861 = vmatprep.subr.bf16.mxu0 (!%p221_p10), %v2709_v19  ;;  %v306_v31 = vld [vmem:[%s4632_s1 + $0x90] sm:$0xff] (!%p221_p10)  ;;  %v305_v45 = vld [vmem:[%s4632_s1 + $0x88] sm:$0xff] (!%p221_p10) }
  0x18   : > { %v308_v9 = vld [vmem:[%s4632_s1 + $0xa0] sm:$0xff] (!%p221_p10)  ;;  %636 = vmatpush1.bf16.msra.mxu1 (!%p221_p10), %v2704_v4  ;;  %862 = vmatpush1.bf16.msra.mxu0 (!%p221_p10), %v2708_v20  ;;  %v2716_v25 = vcombine.low (!%p221_p10), %v298_v16, %v302_v17  ;;  %v310_v32 = vld [vmem:[%s4632_s1 + $0xb0] sm:$0xff] (!%p221_p10)  ;;  %v2715_v46 = vcombine.high (!%p221_p10), %v297_v38, %v301_v39  ;;  %v309_v47 = vld [vmem:[%s4632_s1 + $0xa8] sm:$0xff] (!%p221_p10)  ;;  %v2714_v50 = vcombine.low (!%p221_p10), %v297_v38, %v301_v39 }
  0x19   : > { %637 = vmatprep.subr.bf16.mxu1 (!%p221_p10), %v2713_v7  ;;  %v2721_v11 = vcombine.high (!%p221_p10), %v304_v8, %v308_v9  ;;  %v312_v12 = vld [vmem:[%s4632_s1 + $0xc0] sm:$0xff] (!%p221_p10)  ;;  %v2720_v18 = vcombine.low (!%p221_p10), %v304_v8, %v308_v9  ;;  %863 = vmatprep.subr.bf16.mxu0 (!%p221_p10), %v2717_v21  ;;  %v314_v33 = vld [vmem:[%s4632_s1 + $0xd0] sm:$0xff] (!%p221_p10)  ;;  %v2725_v35 = vcombine.high (!%p221_p10), %v306_v31, %v310_v32  ;;  %v313_v51 = vld [vmem:[%s4632_s1 + $0xc8] sm:$0xff] (!%p221_p10) }
  0x1a   : > { %v316_v13 = vld [vmem:[%s4632_s1 + $0xe0] sm:$0xff] (!%p221_p10)  ;;  %v2724_v36 = vcombine.low (!%p221_p10), %v306_v31, %v310_v32  ;;  %v318_v37 = vld [vmem:[%s4632_s1 + $0xf0] sm:$0xff] (!%p221_p10)  ;;  %v317_v52 = vld [vmem:[%s4632_s1 + $0xe8] sm:$0xff] (!%p221_p10)  ;;  %v2723_v54 = vcombine.high (!%p221_p10), %v305_v45, %v309_v47  ;;  %v2722_v56 = vcombine.low (!%p221_p10), %v305_v45, %v309_v47 }
  0x1b   : > { %s3538_s13 = scalar_select %p257_p12, %s3396_s22, 1  ;;  %v2729_v22 = vcombine.high %v312_v12, %v316_v13  ;;  %v320_v23 = vld [vmem:[%s4632_s1 + $0x100] sm:$0xff]  ;;  %v2728_v26 = vcombine.low %v312_v12, %v316_v13  ;;  %v2733_v40 = vcombine.high %v314_v33, %v318_v37  ;;  %v322_v42 = vld [vmem:[%s4632_s1 + $0x110] sm:$0xff]  ;;  %v2732_v48 = vcombine.low %v314_v33, %v318_v37  ;;  %v321_v57 = vld [vmem:[%s4632_s1 + $0x108] sm:$0xff] }
  0x1c   : > { %s4660_s26 = smov (!%p259_p13, %s2692_s26), 31  ;;  %638 = vmatpush1.bf16.msra.mxu1 %v2712_v10  ;;  %v324_v24 = vld [vmem:[%s4632_s1 + $0x120] sm:$0xff]  ;;  %864 = vmatpush1.bf16.msra.mxu0 %v2716_v25  ;;  %v326_v43 = vld [vmem:[%s4632_s1 + $0x130] sm:$0xff]  ;;  %v325_v58 = vld [vmem:[%s4632_s1 + $0x128] sm:$0xff]  ;;  %v2731_v59 = vcombine.high %v313_v51, %v317_v52  ;;  %v2730_v60 = vcombine.low %v313_v51, %v317_v52 }
  0x1d   : > { %s2693_s14 = sshll.u32 %s3538_s13, 5  ;;  %639 = vmatprep.subr.bf16.mxu1 %v2721_v11  ;;  %v2737_v27 = vcombine.high %v320_v23, %v324_v24  ;;  %v2736_v30 = vcombine.low %v320_v23, %v324_v24  ;;  %865 = vmatprep.subr.bf16.mxu0 %v2725_v35  ;;  %v2741_v49 = vcombine.high %v322_v42, %v326_v43  ;;  %v291_v61 = vld [vmem:[%s4632_s1 + $0x18] sm:$0xff]  ;;  %v3170_v28 = vld [vmem:[%s4634_s3 + $0x100] ss:$8 sps:$4 sm:$0xff]   ;;  %v3178_v31 = vld [vmem:[%s4634_s3 + $0x124] ss:$8 sps:$4 sm:$0xff]  }
  0x1e   : > { %s262_s15 = sadd.s32 %s2693_s14, %s4660_s26  ;;  %v2740_v55 = vcombine.low %v322_v42, %v326_v43  ;;  %v295_v62 = vld [vmem:[%s4632_s1 + $0x38] sm:$0xff]  ;;  %v2739_v0 = vcombine.high %v321_v57, %v325_v58  ;;  %v2738_v1 = vcombine.low %v321_v57, %v325_v58  ;;  %v3176_v32 = vld [vmem:[%s4634_s3 + $0x120] ss:$8 sps:$4 sm:$0xff]   ;;  %v3184_v35 = vld [vmem:[%s4634_s3 + $0x144] ss:$8 sps:$4 sm:$0xff]   ;;  %s2695_s26 = sshll.u32 %s3538_s13, 1 }
  0x1f   : > { %s2694_s8 = sshll.u32 %s262_s15, 2  ;;  %v2711_v2 = vcombine.high %v291_v61, %v295_v62  ;;  %v299_v9 = vld [vmem:[%s4632_s1 + $0x58] sm:$0xff]  ;;  %v2710_v11 = vcombine.low %v291_v61, %v295_v62  ;;  %v3190_v39 = vld [vmem:[%s4634_s3 + $0x164] ss:$8 sps:$4 sm:$0xff]   ;;  %v3122_v45 = vld [vmem:[%s4634_s3] ss:$8 sps:$4 sm:$0xff]   ;;  %s269_s17 = scalar_lea.vmem %s4635_s4, %s2695_s26 }
  0x20   : > { %s3553_s28 = scalar_lea.vmem %s4631_s0, %s2694_s8  ;;  %640 = vmatpush1.bf16.msra.mxu1 %v2720_v18  ;;  %866 = vmatpush1.bf16.msra.mxu0 %v2724_v36  ;;  %v303_v10 = vld [vmem:[%s4632_s1 + $0x78] sm:$0xff]  ;;  %v3182_v36 = vld [vmem:[%s4634_s3 + $0x140] ss:$8 sps:$4 sm:$0xff]   ;;  %v3202_v51 = vld [vmem:[%s4634_s3 + $0x1a4] ss:$8 sps:$4 sm:$0xff]   ;;  %s4479_s13 = scalar_lea.vmem [#allocation2], %s2691_s29 }
  0x21   : > { %641 = vmatprep.subr.bf16.mxu1 %v2729_v22  ;;  %v3595_v41 = vld [vmem:[%s3553_s28] sm:$0xff]   ;;  %867 = vmatprep.subr.bf16.mxu0 %v2733_v40  ;;  %v3619_v53 = vld [vmem:[%s3553_s28 + $0x8] sm:$0xff]   ;;  %v3637_v63 = vld [vmem:[%s3553_s28 + $0x10] sm:$0xff]   ;;  %v2719_v12 = vcombine.high %v299_v9, %v303_v10  ;;  %v2718_v15 = vcombine.low %v299_v9, %v303_v10  ;;  %s2911_s15 = sshll.u32 %s3392_s21, 5  ;;  %s2592_s22 = sshll.u32 %s4479_s13, 4  ;;  %s4572_s22 = int_to_ptr.vmem [resolvable:$true] %s2592_s22 }
  0x22   : > { %v3646_v3 = vld [vmem:[%s3553_s28 + $0x18] sm:$0xff]   ;;  %v3655_v4 = vld [vmem:[%s3553_s28 + $0x20] sm:$0xff]   ;;  %v3664_v5 = vld [vmem:[%s3553_s28 + $0x28] sm:$0xff]   ;;  %s2589_s30 = sadd.s32 %s2911_s15, %s2907_s24  ;;  %s3314_s12 = scalar_lea.vmem %s4572_s22, 4096 }
  0x23   : > { %v3673_v7 = vld [vmem:[%s3553_s28 + $0x30] sm:$0xff]   ;;  %v3685_v8 = vld [vmem:[%s3553_s28 + $0x38] sm:$0xff]   ;;  %v3188_v40 = vld [vmem:[%s4634_s3 + $0x160] ss:$8 sps:$4 sm:$0xff]   ;;  %s2908_s21 = sshll.u32 %s2589_s30, 7  ;;  %p3315_p0 = scmp.ne.s32.totalorder %s4572_s22, %s3314_s12 }
  0x24   : > { %642 = vmatpush1.bf16.msra.mxu1 %v2728_v26  ;;  %868 = vmatpush1.bf16.msra.mxu0 %v2732_v48  ;;  %v307_v13 = vld [vmem:[%s4632_s1 + $0x98] sm:$0xff]  ;;  %v3124_v26 = vld [vmem:[%s4634_s3 + $0x4] ss:$8 sps:$4 sm:$0xff]   ;;  %v3128_v52 = vld [vmem:[%s4634_s3 + $0x20] ss:$8 sps:$4 sm:$0xff]   ;;  %s4570_s9 = scalar_lea.hbm %s4636_s5, %s2908_s21  ;;  %s3411_s26 = smov [#allocation2]  }
  0x25   : > { %643 = vmatprep.subr.bf16.mxu1 %v2737_v27  ;;  %869 = vmatprep.subr.bf16.mxu0 %v2741_v49  ;;  %v311_v14 = vld [vmem:[%s4632_s1 + $0xb8] sm:$0xff]  ;;  %v3172_v27 = vld [vmem:[%s4634_s3 + $0x104] ss:$8 sps:$4 sm:$0xff]   ;;  %v3206_v61 = vld [vmem:[%s4634_s3 + $0x1c0] ss:$8 sps:$4 sm:$0xff]   ;;  %p3316_p1 = pnand %p3315_p0, %p3495_p3  ;;  %s3318_s14 = sshll.u32 %s3411_s26, 4  ;;  %s3319_s14 = int_to_ptr.vmem [resolvable:$false] %s3318_s14 }
  0x26   : > { %v2727_v16 = vcombine.high %v307_v13, %v311_v14  ;;  %v315_v17 = vld [vmem:[%s4632_s1 + $0xd8] sm:$0xff]  ;;  %v2726_v19 = vcombine.low %v307_v13, %v311_v14  ;;  %v3214_v9 = vld [vmem:[%s4634_s3 + $0x1e4] ss:$8 sps:$4 sm:$0xff]   ;;  %v3140_v10 = vld [vmem:[%s4634_s3 + $0x60] ss:$8 sps:$4 sm:$0xff]   ;;  %s3320_s16 = scalar_lea.vmem %s3319_s14, 8192  ;;  %p3321_p4 = scmp.lt.s32.totalorder %s4572_s22, %s3319_s14 }
  0x27   : > { %v319_v18 = vld [vmem:[%s4632_s1 + $0xf8] sm:$0xff]  ;;  %p3317_p2 = pneg %p3316_p1  ;;  %p3322_p5 = scmp.lt.s32.totalorder %s3320_s16, %s3314_s12 }
  0x28   : > { %644 = vmatpush1.bf16.msra.mxu1 %v2736_v30  ;;  %870 = vmatpush1.bf16.msra.mxu0 %v2740_v55  ;;  %v2735_v20 = vcombine.high %v315_v17, %v319_v18  ;;  %v323_v21 = vld [vmem:[%s4632_s1 + $0x118] sm:$0xff]  ;;  %v2734_v23 = vcombine.low %v315_v17, %v319_v18  ;;  %v3146_v17 = vld [vmem:[%s4634_s3 + $0x80] ss:$8 sps:$4 sm:$0xff]  }
  0x29   : > { %748 = vmatprep.subr.bf16.mxu1 %v2707_v34  ;;  %v327_v22 = vld [vmem:[%s4632_s1 + $0x138] sm:$0xff]  ;;  %2172 = vmatprep.subr.bf16.mxu0 %v3172_v27  ;;  %v3164_v27 = vld [vmem:[%s4634_s3 + $0xe0] ss:$8 sps:$4 sm:$0xff]   ;;  %p3323_p6 = por %p3322_p5, %p3321_p4 }
  0x2a   : > { %v2743_v24 = vcombine.high %v323_v21, %v327_v22  ;;  %v2742_v25 = vcombine.low %v323_v21, %v327_v22  ;;  %v3175_v29 = vld [vmem:[%s4634_s3 + $0x114] ss:$8 sps:$4 sm:$0xff]   ;;  %v3173_v30 = vld [vmem:[%s4634_s3 + $0x110] ss:$8 sps:$4 sm:$0xff]   ;;  %v3152_v21 = vld [vmem:[%s4634_s3 + $0xa0] ss:$8 sps:$4 sm:$0xff]  }
  0x2b   : > { %2744 = vmatmul.mubr.msk.bf16.vlgmr.msra.gmra.mrb[0].mxu1 %vm610_vm0, %v3595_v41  ;;  %2760 = vmatmul.mubr.msk.bf16.vlgmr.msra.gmra.mrb[0].mxu0 %vm610_vm0, %v3595_v41  ;;  %v3181_v33 = vld [vmem:[%s4634_s3 + $0x134] ss:$8 sps:$4 sm:$0xff]   ;;  %v3179_v34 = vld [vmem:[%s4634_s3 + $0x130] ss:$8 sps:$4 sm:$0xff]   ;;  %p3324_p7 = pnand %p3323_p6, %p3317_p2 }
  0x2c   : > { %749 = vmatpush1.bf16.msra.mxu1 %v2706_v44  ;;  %677 = vmatprep.mubr.bf16.mxu1 %v3410_v6  ;;  %v3187_v37 = vld [vmem:[%s4634_s3 + $0x154] ss:$8 sps:$4 sm:$0xff]   ;;  %v3185_v38 = vld [vmem:[%s4634_s3 + $0x150] ss:$8 sps:$4 sm:$0xff]   ;;  %v3196_v44 = vld [vmem:[%s4634_s3 + $0x184] ss:$8 sps:$4 sm:$0xff]  }
  0x2d   : > { %750 = vmatprep.subr.bf16.mxu1 %v2715_v46  ;;  %903 = vmatprep.mubr.bf16.mxu0 %v3410_v6  ;;  %v3193_v42 = vld [vmem:[%s4634_s3 + $0x174] ss:$8 sps:$4 sm:$0xff]   ;;  %v3191_v43 = vld [vmem:[%s4634_s3 + $0x170] ss:$8 sps:$4 sm:$0xff]   ;;  %v3194_v46 = vld [vmem:[%s4634_s3 + $0x180] ss:$8 sps:$4 sm:$0xff]  }
  0x2e   : > { %2173 = vmatpush1.bf16.msra.mxu0 %v3170_v28  ;;  %v3127_v47 = vld [vmem:[%s4634_s3 + $0x14] ss:$8 sps:$4 sm:$0xff]   ;;  %v3125_v49 = vld [vmem:[%s4634_s3 + $0x10] ss:$8 sps:$4 sm:$0xff]   ;;  %v330_v28 = vlaneseq }
  0x2f   : > { %2174 = vmatprep.subr.bf16.mxu0 %v3175_v29  ;;  %v3199_v48 = vld [vmem:[%s4634_s3 + $0x194] ss:$8 sps:$4 sm:$0xff]   ;;  %v3131_v57 = vld [vmem:[%s4634_s3 + $0x30] ss:$8 sps:$4 sm:$0xff]  }
  0x30   : > { %751 = vmatpush1.bf16.msra.mxu1 %v2714_v50  ;;  %v3197_v50 = vld [vmem:[%s4634_s3 + $0x190] ss:$8 sps:$4 sm:$0xff]   ;;  %v3133_v55 = vld [vmem:[%s4634_s3 + $0x34] ss:$8 sps:$4 sm:$0xff]   ;;  %v3961_v29 = vshrl.u32 %v330_v28, 7 }
  0x31   : > { %752 = vmatprep.subr.bf16.mxu1 %v2723_v54  ;;  %v3200_v54 = vld [vmem:[%s4634_s3 + $0x1a0] ss:$8 sps:$4 sm:$0xff]   ;;  %v3203_v58 = vld [vmem:[%s4634_s3 + $0x1b0] ss:$8 sps:$4 sm:$0xff]   ;;  %v3139_v62 = vld [vmem:[%s4634_s3 + $0x54] ss:$8 sps:$4 sm:$0xff]  }
  0x32   : > { %2175 = vmatpush1.bf16.msra.mxu0 %v3173_v30  ;;  %v3217_v13 = vld [vmem:[%s4634_s3 + $0x1f4] ss:$8 sps:$4 sm:$0xff]   ;;  %v3143_v14 = vld [vmem:[%s4634_s3 + $0x70] ss:$8 sps:$4 sm:$0xff]   ;;  %v332_v30 = vsub.s32 0, %v3961_v29 }
  0x33   : > { %2745 = vmatmul.mubr.msk.bf16.gmra.mrb[4].mxu1 %vm610_vm0, %v3619_v53  ;;  %2761 = vmatmul.mubr.msk.bf16.gmra.mrb[4].mxu0 %vm610_vm0, %v3619_v53  ;;  %v3151_v18 = vld [vmem:[%s4634_s3 + $0x94] ss:$8 sps:$4 sm:$0xff]   ;;  %v3155_v22 = vld [vmem:[%s4634_s3 + $0xb0] ss:$8 sps:$4 sm:$0xff]  }
  0x34   : > { %687 = vmatprep.mubr.bf16.mxu1 %v3410_v6  ;;  %753 = vmatpush1.bf16.msra.mxu1 %v2722_v56  ;;  %v3205_v56 = vld [vmem:[%s4634_s3 + $0x1b4] ss:$8 sps:$4 sm:$0xff]  }
  0x35   : > { %754 = vmatprep.subr.bf16.mxu1 %v2731_v59  ;;  %913 = vmatprep.mubr.bf16.mxu0 %v3410_v6  ;;  %v3208_v59 = vld [vmem:[%s4634_s3 + $0x1c4] ss:$8 sps:$4 sm:$0xff]  }
  0x36   : > { %2176 = vmatprep.subr.bf16.mxu0 %v3178_v31  ;;  %v3967_v31 = vld [vmem:[%s4633_s2] sm:$0xff] }
  0x37   : > { %2177 = vmatpush1.bf16.msra.mxu0 %v3176_v32  ;;  %v336_v32 = vsub.s32 1, %v3961_v29 }
  0x38   : > { %755 = vmatpush1.bf16.msra.mxu1 %v2730_v60  ;;  %2178 = vmatprep.subr.bf16.mxu0 %v3181_v33  ;;  %v3134_v60 = vld [vmem:[%s4634_s3 + $0x40] ss:$8 sps:$4 sm:$0xff]  }
  0x39   : > { %756 = vmatprep.subr.bf16.mxu1 %v2739_v0  ;;  %v3211_v0 = vld [vmem:[%s4634_s3 + $0x1d4] ss:$8 sps:$4 sm:$0xff]   ;;  %v3978_v33 = vrot.slane %v3967_v31, %v336_v32 }
  0x3b   : > { %2746 = vmatmul.mubr.msk.bf16.gmra.mrb[8].mxu1 %vm610_vm0, %v3637_v63  ;;  %2762 = vmatmul.mubr.msk.bf16.gmra.mrb[8].mxu0 %vm610_vm0, %v3637_v63 }
  0x3c   : > { %697 = vmatprep.mubr.bf16.mxu1 %v3410_v6  ;;  %757 = vmatpush1.bf16.msra.mxu1 %v2738_v1  ;;  %v3137_v1 = vld [vmem:[%s4634_s3 + $0x50] ss:$8 sps:$4 sm:$0xff]  }
  0x3d   : > { %974 = vmatprep.subr.bf16.mxu1 %v2711_v2  ;;  %923 = vmatprep.mubr.bf16.mxu0 %v3410_v6  ;;  %v3209_v2 = vld [vmem:[%s4634_s3 + $0x1d0] ss:$8 sps:$4 sm:$0xff]  }
  0x3e   : > { %2179 = vmatpush1.bf16.msra.mxu0 %v3179_v34 }
  0x3f   : > { %2180 = vmatprep.subr.bf16.mxu0 %v3184_v35 }
  0x42   : > { %2181 = vmatpush1.bf16.msra.mxu0 %v3182_v36 }
  0x43   : > { %2747 = vmatmul.mubr.msk.bf16.gmra.mrb[12].mxu1 %vm610_vm0, %v3646_v3  ;;  %2763 = vmatmul.mubr.msk.bf16.gmra.mrb[12].mxu0 %vm610_vm0, %v3646_v3 }
  0x44   : > { %707 = vmatprep.mubr.bf16.mxu1 %v3410_v6  ;;  %933 = vmatprep.mubr.bf16.mxu0 %v3410_v6 }
  0x45   : > { %2182 = vmatprep.subr.bf16.mxu0 %v3187_v37 }
  0x46   : > { %2183 = vmatpush1.bf16.msra.mxu0 %v3185_v38 }
  0x47   : > { %2184 = vmatprep.subr.bf16.mxu0 %v3190_v39 }
  0x4a   : > { %2185 = vmatpush1.bf16.msra.mxu0 %v3188_v40 }
  0x4b   : > { %2748 = vmatmul.mubr.msk.bf16.gmra.mrb[16].mxu1 %vm610_vm0, %v3655_v4  ;;  %2764 = vmatmul.mubr.msk.bf16.gmra.mrb[16].mxu0 %vm610_vm0, %v3655_v4 }
  0x4c   : > { %717 = vmatprep.mubr.bf16.mxu1 %v3410_v6  ;;  %943 = vmatprep.mubr.bf16.mxu0 %v3410_v6 }
  0x4d   : > { %2186 = vmatprep.subr.bf16.mxu0 %v3193_v42  ;;  %v348_v42 = vsub.s32 4, %v3961_v29 }
  0x4e   : > { %2187 = vmatpush1.bf16.msra.mxu0 %v3191_v43 }
  0x4f   : > { %2188 = vmatprep.subr.bf16.mxu0 %v3196_v44  ;;  %v352_v44 = vsub.s32 5, %v3961_v29 }
  0x52   : > { %2189 = vmatpush1.bf16.msra.mxu0 %v3194_v46 }
  0x53   : > { %2749 = vmatmul.mubr.msk.bf16.gmra.mrb[20].mxu1 %vm610_vm0, %v3664_v5  ;;  %2765 = vmatmul.mubr.msk.bf16.gmra.mrb[20].mxu0 %vm610_vm0, %v3664_v5 }
  0x54   : > { %727 = vmatprep.mubr.bf16.mxu1 %v3410_v6  ;;  %953 = vmatprep.mubr.bf16.mxu0 %v3410_v6 }
  0x55   : > { %2190 = vmatprep.subr.bf16.mxu0 %v3199_v48 }
  0x56   : > { %2191 = vmatpush1.bf16.msra.mxu0 %v3197_v50  ;;  %v3987_v50 = vrot.slane %v3967_v31, %v348_v42 }
  0x57   : > { %2192 = vmatprep.subr.bf16.mxu0 %v3202_v51 }
  0x5a   : > { %2193 = vmatpush1.bf16.msra.mxu0 %v3200_v54 }
  0x5b   : > { %2750 = vmatmul.mubr.msk.bf16.gmra.mrb[24].mxu1 %vm610_vm0, %v3673_v7  ;;  %2766 = vmatmul.mubr.msk.bf16.gmra.mrb[24].mxu0 %vm610_vm0, %v3673_v7 }
  0x5c   : > { %737 = vmatprep.mubr.bf16.mxu1 %v3410_v6  ;;  %963 = vmatprep.mubr.bf16.mxu0 %v3410_v6 }
  0x5d   : > { %2194 = vmatprep.subr.bf16.mxu0 %v3205_v56 }
  0x5e   : > { %2195 = vmatpush1.bf16.msra.mxu0 %v3203_v58 }
  0x5f   : > { %2196 = vmatprep.subr.bf16.mxu0 %v3208_v59 }
  0x62   : > { %2197 = vmatpush1.bf16.msra.mxu0 %v3206_v61 }
  0x63   : > { %2751 = vmatmul.mubr.msk.bf16.gmra.mrb[28].mxu1 %vm610_vm0, %v3685_v8  ;;  %2767 = vmatmul.mubr.msk.bf16.gmra.mrb[28].mxu0 %vm610_vm0, %v3685_v8 }
  0x64   : > { %780 = vmatprep.mubr.bf16.mxu1 %v3410_v6  ;;  %2198 = vmatprep.subr.bf16.mxu0 %v3211_v0 }
  0x66   : > { %2199 = vmatpush1.bf16.msra.mxu0 %v3209_v2 }
  0x67   : > { %2200 = vmatprep.subr.bf16.mxu0 %v3214_v9 }
  0x6b   : > { %2752 = vmatmul.mubr.msk.bf16.vlgmr.msra.gmra.mrb[32].mxu1 %vm610_vm0, %v3595_v41 }
  0x6c   : > { %790 = vmatprep.mubr.bf16.mxu1 %v3410_v6  ;;  %975 = vmatpush1.bf16.msra.mxu1 %v2710_v11  ;;  %v3212_v11 = vld [vmem:[%s4634_s3 + $0x1e0] ss:$8 sps:$4 sm:$0xff]  }
  0x6d   : > { %976 = vmatprep.subr.bf16.mxu1 %v2719_v12  ;;  %v3145_v12 = vld [vmem:[%s4634_s3 + $0x74] ss:$8 sps:$4 sm:$0xff]   ;;  %2201 = vmatpush1.bf16.msra.mxu0 %v3212_v11 }
  0x6e   : > { %2202 = vmatprep.subr.bf16.mxu0 %v3217_v13 }
  0x70   : > { %977 = vmatpush1.bf16.msra.mxu1 %v2718_v15  ;;  %v3215_v15 = vld [vmem:[%s4634_s3 + $0x1f0] ss:$8 sps:$4 sm:$0xff]  }
  0x71   : > { %978 = vmatprep.subr.bf16.mxu1 %v2727_v16  ;;  %2203 = vmatpush1.bf16.msra.mxu0 %v3215_v15  ;;  %v3220_v16 = vld [vmem:[%s4634_s3 + $0x204] ss:$8 sps:$4 sm:$0xff]  }
  0x72   : > { %2285 = vmatprep.subr.bf16.mxu0 %v3220_v16 }
  0x73   : > { %2753 = vmatmul.mubr.msk.bf16.gmra.mrb[36].mxu1 %vm610_vm0, %v3619_v53 }
  0x74   : > { %800 = vmatprep.mubr.bf16.mxu1 %v3410_v6  ;;  %979 = vmatpush1.bf16.msra.mxu1 %v2726_v19  ;;  %v3149_v19 = vld [vmem:[%s4634_s3 + $0x90] ss:$8 sps:$4 sm:$0xff]  }
  0x75   : > { %980 = vmatprep.subr.bf16.mxu1 %v2735_v20  ;;  %v3154_v20 = vld [vmem:[%s4634_s3 + $0xa4] ss:$8 sps:$4 sm:$0xff]  }
  0x78   : > { %981 = vmatpush1.bf16.msra.mxu1 %v2734_v23  ;;  %v3160_v23 = vld [vmem:[%s4634_s3 + $0xc4] ss:$8 sps:$4 sm:$0xff]  }
  0x79   : > { %982 = vmatprep.subr.bf16.mxu1 %v2743_v24  ;;  %v3158_v24 = vld [vmem:[%s4634_s3 + $0xc0] ss:$8 sps:$4 sm:$0xff]  }
  0x7b   : > { %2754 = vmatmul.mubr.msk.bf16.gmra.mrb[40].mxu1 %vm610_vm0, %v3637_v63 }
  0x7c   : > { %810 = vmatprep.mubr.bf16.mxu1 %v3410_v6  ;;  %983 = vmatpush1.bf16.msra.mxu1 %v2742_v25  ;;  %v3161_v25 = vld [vmem:[%s4634_s3 + $0xd0] ss:$8 sps:$4 sm:$0xff]  }
  0x7d   : > { %2059 = vmatprep.subr.bf16.mxu1 %v3124_v26  ;;  %v3166_v26 = vld [vmem:[%s4634_s3 + $0xe4] ss:$8 sps:$4 sm:$0xff]  }
  0x83   : > { %2755 = vmatmul.mubr.msk.bf16.gmra.mrb[44].mxu1 %vm610_vm0, %v3646_v3 }
  0x84   : > { %820 = vmatprep.mubr.bf16.mxu1 %v3410_v6 }
  0x8b   : > { %2756 = vmatmul.mubr.msk.bf16.gmra.mrb[48].mxu1 %vm610_vm0, %v3655_v4 }
  0x8c   : > { %830 = vmatprep.mubr.bf16.mxu1 %v3410_v6 }
  0x93   : > { %2757 = vmatmul.mubr.msk.bf16.gmra.mrb[52].mxu1 %vm610_vm0, %v3664_v5 }
  0x94   : > { %840 = vmatprep.mubr.bf16.mxu1 %v3410_v6 }
  0x9b   : > { %2758 = vmatmul.mubr.msk.bf16.gmra.mrb[56].mxu1 %vm610_vm0, %v3673_v7 }
  0x9c   : > { %850 = vmatprep.mubr.bf16.mxu1 %v3410_v6 }
  0xa3   : > { %2759 = vmatmul.mubr.msk.bf16.gmra.mrb[60].mxu1 %vm610_vm0, %v3685_v8 }
  0xa4   : > { %1006 = vmatprep.mubr.bf16.mxu1 %v3410_v6 }
  0xab   : > { %2768 = vmatmul.mubr.msk.bf16.vlgmr.msra.gmra.mrb[64].mxu1 %vm610_vm0, %v3595_v41  ;;  %v3130_v41 = vld [vmem:[%s4634_s3 + $0x24] ss:$8 sps:$4 sm:$0xff]  }
  0xac   : > { %2060 = vmatpush1.bf16.msra.mxu1 %v3122_v45  ;;  %1016 = vmatprep.mubr.bf16.mxu1 %v3410_v6 }
  0xad   : > { %2061 = vmatprep.subr.bf16.mxu1 %v3127_v47 }
  0xb0   : > { %2062 = vmatpush1.bf16.msra.mxu1 %v3125_v49 }
  0xb1   : > { %2063 = vmatprep.subr.bf16.mxu1 %v3130_v41 }
  0xb3   : > { %2769 = vmatmul.mubr.msk.bf16.gmra.mrb[68].mxu1 %vm610_vm0, %v3619_v53  ;;  %v3136_v53 = vld [vmem:[%s4634_s3 + $0x44] ss:$8 sps:$4 sm:$0xff]  }
  0xb4   : > { %2064 = vmatpush1.bf16.msra.mxu1 %v3128_v52  ;;  %1026 = vmatprep.mubr.bf16.mxu1 %v3410_v6  ;;  %v3990_v52 = vrot.slane %v3967_v31, %v352_v44 }
  0xb5   : > { %2065 = vmatprep.subr.bf16.mxu1 %v3133_v55 }
  0xb8   : > { %2066 = vmatpush1.bf16.msra.mxu1 %v3131_v57 }
  0xb9   : > { %2067 = vmatprep.subr.bf16.mxu1 %v3136_v53 }
  0xbb   : > { %2770 = vmatmul.mubr.msk.bf16.gmra.mrb[72].mxu1 %vm610_vm0, %v3637_v63  ;;  %v3142_v63 = vld [vmem:[%s4634_s3 + $0x64] ss:$8 sps:$4 sm:$0xff]  }
  0xbc   : > { %2068 = vmatpush1.bf16.msra.mxu1 %v3134_v60  ;;  %1036 = vmatprep.mubr.bf16.mxu1 %v3410_v6 }
  0xbd   : > { %2069 = vmatprep.subr.bf16.mxu1 %v3139_v62 }
  0xc0   : > { %2070 = vmatpush1.bf16.msra.mxu1 %v3137_v1 }
  0xc1   : > { %2071 = vmatprep.subr.bf16.mxu1 %v3142_v63 }
  0xc3   : > { %2771 = vmatmul.mubr.msk.bf16.gmra.mrb[76].mxu1 %vm610_vm0, %v3646_v3  ;;  %v3148_v3 = vld [vmem:[%s4634_s3 + $0x84] ss:$8 sps:$4 sm:$0xff]  }
  0xc4   : > { %2072 = vmatpush1.bf16.msra.mxu1 %v3140_v10  ;;  %1046 = vmatprep.mubr.bf16.mxu1 %v3410_v6 }
  0xc5   : > { %2073 = vmatprep.subr.bf16.mxu1 %v3145_v12 }
  0xc8   : > { %2074 = vmatpush1.bf16.msra.mxu1 %v3143_v14 }
  0xc9   : > { %2075 = vmatprep.subr.bf16.mxu1 %v3148_v3 }
  0xcb   : > { %2772 = vmatmul.mubr.msk.bf16.gmra.mrb[80].mxu1 %vm610_vm0, %v3655_v4  ;;  %v3157_v4 = vld [vmem:[%s4634_s3 + $0xb4] ss:$8 sps:$4 sm:$0xff]  }
  0xcc   : > { %2076 = vmatpush1.bf16.msra.mxu1 %v3146_v17  ;;  %1056 = vmatprep.mubr.bf16.mxu1 %v3410_v6 }
  0xcd   : > { %2077 = vmatprep.subr.bf16.mxu1 %v3151_v18 }
  0xd0   : > { %2078 = vmatpush1.bf16.msra.mxu1 %v3149_v19 }
  0xd1   : > { %2079 = vmatprep.subr.bf16.mxu1 %v3154_v20 }
  0xd3   : > { %2773 = vmatmul.mubr.msk.bf16.gmra.mrb[84].mxu1 %vm610_vm0, %v3664_v5  ;;  %v3163_v5 = vld [vmem:[%s4634_s3 + $0xd4] ss:$8 sps:$4 sm:$0xff]  }
  0xd4   : > { %2080 = vmatpush1.bf16.msra.mxu1 %v3152_v21  ;;  %1066 = vmatprep.mubr.bf16.mxu1 %v3410_v6 }
  0xd5   : > { %2081 = vmatprep.subr.bf16.mxu1 %v3157_v4 }
  0xd8   : > { %2082 = vmatpush1.bf16.msra.mxu1 %v3155_v22 }
  0xd9   : > { %2083 = vmatprep.subr.bf16.mxu1 %v3160_v23 }
  0xdb   : > { %2774 = vmatmul.mubr.msk.bf16.gmra.mrb[88].mxu1 %vm610_vm0, %v3673_v7  ;;  %v3169_v7 = vld [vmem:[%s4634_s3 + $0xf4] ss:$8 sps:$4 sm:$0xff]  }
  0xdc   : > { %2084 = vmatpush1.bf16.msra.mxu1 %v3158_v24  ;;  %1076 = vmatprep.mubr.bf16.mxu1 %v3410_v6  ;;  %v3167_v6 = vld [vmem:[%s4634_s3 + $0xf0] ss:$8 sps:$4 sm:$0xff]  }
  0xdd   : > { %2085 = vmatprep.subr.bf16.mxu1 %v3163_v5 }
  0xe0   : > { %2086 = vmatpush1.bf16.msra.mxu1 %v3161_v25 }
  0xe1   : > { %2087 = vmatprep.subr.bf16.mxu1 %v3166_v26 }
  0xe3   : > { %2775 = vmatmul.mubr.msk.bf16.gmra.mrb[92].mxu1 %vm610_vm0, %v3685_v8  ;;  %v3973_v8 = vrot.slane %v3967_v31, %v332_v30 }
  0xe4   : > { %2088 = vmatpush1.bf16.msra.mxu1 %v3164_v27 }
  0xe5   : > { %2089 = vmatprep.subr.bf16.mxu1 %v3169_v7 }
  0xe8   : > { %2090 = vmatpush1.bf16.msra.mxu1 %v3167_v6 }
  0xfe   : > { %v669_v34 = vpop.f32.mrb[0].mxu1  ;;  %v895_v58 = vpop.f32.mrb[0].mxu0 }
  0xff   : > { %v670_v35 = vadd.f32 %v669_v34, %v3973_v8  ;;  %v671_v36 = vpop.f32.mrb[1].mxu1  ;;  %v896_v60 = vadd.f32 %v895_v58, %v3987_v50  ;;  %v897_v61 = vpop.f32.mrb[1].mxu0 }
 0x100   : > { %v672_v37 = vadd.f32 %v671_v36, %v3978_v33  ;;  %v673_v38 = vpop.f32.mrb[2].mxu1  ;;  %v898_v0 = vadd.f32 %v897_v61, %v3990_v52  ;;  %v899_v1 = vpop.f32.mrb[2].mxu0 }
 0x101   : > { %v674_v39 = vadd.f32 %v673_v38, %v3973_v8  ;;  %v675_v40 = vpop.f32.mrb[3].mxu1  ;;  %v1087_v45 = vmax.f32 %v670_v35, 0.0  ;;  %v1091_v9 = vmax.f32 %v896_v60, 0.0  ;;  %v900_v10 = vadd.f32 %v899_v1, %v3987_v50  ;;  %v901_v11 = vpop.f32.mrb[3].mxu0 }
 0x102   : > { %v676_v43 = vadd.f32 %v675_v40, %v3978_v33  ;;  %v1088_v47 = vmax.f32 %v672_v37, 0.0  ;;  %v1092_v14 = vmax.f32 %v898_v0, 0.0  ;;  %v902_v15 = vadd.f32 %v901_v11, %v3990_v52 }
 0x103   : > { %v1095_v46 = vmax.f32 %v674_v39, 0.0  ;;  %v1099_v16 = vmax.f32 %v900_v10, 0.0 }
 0x104   : > { %v1096_v48 = vmax.f32 %v676_v43, 0.0  ;;  %v1100_v19 = vmax.f32 %v902_v15, 0.0 }
 0x105   : > { %v1215_v49 = vpack.c.bf16 %v1095_v46, %v1087_v45  ;;  %v4001_v4 = vpack.c.bf16 %v1099_v16, %v1091_v9 }
 0x106   : > { %v1216_v41 = vpack.c.bf16 %v1096_v48, %v1088_v47  ;;  %v679_v51 = vpop.f32.mrb[4].mxu1  ;;  %v4004_v24 = vpack.c.bf16 %v1100_v19, %v1092_v14  ;;  %v905_v5 = vpop.f32.mrb[4].mxu0 }
 0x107   : > { %v680_v54 = vadd.f32 %v679_v51, %v3973_v8  ;;  %v681_v55 = vpop.f32.mrb[5].mxu1  ;;  %v906_v27 = vadd.f32 %v905_v5, %v3987_v50  ;;  %v907_v7 = vpop.f32.mrb[5].mxu0 }
 0x108   : > { %v682_v56 = vadd.f32 %v681_v55, %v3978_v33  ;;  %v683_v57 = vpop.f32.mrb[6].mxu1  ;;  %2091 = vmatprep.mubr.bf16.mxu1 %v1216_v41  ;;  %v908_v28 = vadd.f32 %v907_v7, %v3990_v52  ;;  %v909_v34 = vpop.f32.mrb[6].mxu0 }
 0x109   : > { %v684_v53 = vadd.f32 %v683_v57, %v3973_v8  ;;  %v685_v59 = vpop.f32.mrb[7].mxu1  ;;  %2092 = vmatmul.mubr.bf16.vlgmr.msra.gmra.mrb[96].mxu1 %v1215_v49  ;;  %v1103_v2 = vmax.f32 %v680_v54, 0.0  ;;  %v1107_v37 = vmax.f32 %v906_v27, 0.0  ;;  %v910_v38 = vadd.f32 %v909_v34, %v3987_v50  ;;  %v911_v39 = vpop.f32.mrb[7].mxu0 }
 0x10a   : > { %v686_v62 = vadd.f32 %v685_v59, %v3978_v33  ;;  %v1104_v12 = vmax.f32 %v682_v56, 0.0  ;;  %v1108_v43 = vmax.f32 %v908_v28, 0.0  ;;  %v912_v44 = vadd.f32 %v911_v39, %v3990_v52 }
 0x10b   : > { %v1111_v63 = vmax.f32 %v684_v53, 0.0  ;;  %v1115_v46 = vmax.f32 %v910_v38, 0.0 }
 0x10c   : > { %v1112_v13 = vmax.f32 %v686_v62, 0.0  ;;  %v1116_v49 = vmax.f32 %v912_v44, 0.0 }
 0x10d   : > { %v1223_v3 = vpack.c.bf16 %v1111_v63, %v1103_v2  ;;  %v4013_v54 = vpack.c.bf16 %v1115_v46, %v1107_v37 }
 0x10e   : > { %v1224_v17 = vpack.c.bf16 %v1112_v13, %v1104_v12  ;;  %v689_v18 = vpop.f32.mrb[8].mxu1  ;;  %v4016_v57 = vpack.c.bf16 %v1116_v49, %v1108_v43  ;;  %v915_v58 = vpop.f32.mrb[8].mxu0 }
 0x10f   : > { %v690_v20 = vadd.f32 %v689_v18, %v3973_v8  ;;  %v691_v21 = vpop.f32.mrb[9].mxu1  ;;  %v916_v60 = vadd.f32 %v915_v58, %v3987_v50  ;;  %v917_v61 = vpop.f32.mrb[9].mxu0 }
 0x110   : > { %v692_v22 = vadd.f32 %v691_v21, %v3978_v33  ;;  %v693_v23 = vpop.f32.mrb[10].mxu1  ;;  %2101 = vmatprep.mubr.bf16.mxu1 %v1224_v17  ;;  %v918_v0 = vadd.f32 %v917_v61, %v3990_v52  ;;  %v919_v1 = vpop.f32.mrb[10].mxu0 }
 0x111   : > { %v694_v25 = vadd.f32 %v693_v23, %v3973_v8  ;;  %v695_v26 = vpop.f32.mrb[11].mxu1  ;;  %2102 = vmatmul.mubr.bf16.gmra.mrb[100].mxu1 %v1223_v3  ;;  %v1119_v35 = vmax.f32 %v690_v20, 0.0  ;;  %v1123_v9 = vmax.f32 %v916_v60, 0.0  ;;  %v920_v10 = vadd.f32 %v919_v1, %v3987_v50  ;;  %v921_v11 = vpop.f32.mrb[11].mxu0 }
 0x112   : > { %v696_v6 = vadd.f32 %v695_v26, %v3978_v33  ;;  %v1120_v40 = vmax.f32 %v692_v22, 0.0  ;;  %v1124_v14 = vmax.f32 %v918_v0, 0.0  ;;  %v922_v15 = vadd.f32 %v921_v11, %v3990_v52 }
 0x113   : > { %v1127_v36 = vmax.f32 %v694_v25, 0.0  ;;  %v1131_v16 = vmax.f32 %v920_v10, 0.0 }
 0x114   : > { %v1128_v42 = vmax.f32 %v696_v6, 0.0  ;;  %v1132_v19 = vmax.f32 %v922_v15, 0.0 }
 0x115   : > { %v1231_v45 = vpack.c.bf16 %v1127_v36, %v1119_v35  ;;  %v4025_v22 = vpack.c.bf16 %v1131_v16, %v1123_v9 }
 0x116   : > { %v1232_v47 = vpack.c.bf16 %v1128_v42, %v1120_v40  ;;  %v699_v48 = vpop.f32.mrb[12].mxu1  ;;  %v4028_v25 = vpack.c.bf16 %v1132_v19, %v1124_v14  ;;  %v925_v26 = vpop.f32.mrb[12].mxu0 }
 0x117   : > { %v700_v41 = vadd.f32 %v699_v48, %v3973_v8  ;;  %v701_v51 = vpop.f32.mrb[13].mxu1  ;;  %v926_v6 = vadd.f32 %v925_v26, %v3987_v50  ;;  %v927_v28 = vpop.f32.mrb[13].mxu0 }
 0x118   : > { %v702_v55 = vadd.f32 %v701_v51, %v3978_v33  ;;  %v703_v56 = vpop.f32.mrb[14].mxu1  ;;  %2111 = vmatprep.mubr.bf16.mxu1 %v1232_v47  ;;  %v928_v35 = vadd.f32 %v927_v28, %v3990_v52  ;;  %v929_v36 = vpop.f32.mrb[14].mxu0 }
 0x119   : > { %v704_v53 = vadd.f32 %v703_v56, %v3973_v8  ;;  %v705_v59 = vpop.f32.mrb[15].mxu1  ;;  %2112 = vmatmul.mubr.bf16.gmra.mrb[104].mxu1 %v1231_v45  ;;  %v1135_v2 = vmax.f32 %v700_v41, 0.0  ;;  %v1139_v39 = vmax.f32 %v926_v6, 0.0  ;;  %v930_v40 = vadd.f32 %v929_v36, %v3987_v50  ;;  %v931_v42 = vpop.f32.mrb[15].mxu0 }
 0x11a   : > { %v706_v62 = vadd.f32 %v705_v59, %v3978_v33  ;;  %v1136_v12 = vmax.f32 %v702_v55, 0.0  ;;  %v1140_v45 = vmax.f32 %v928_v35, 0.0  ;;  %v932_v46 = vadd.f32 %v931_v42, %v3990_v52 }
 0x11b   : > { %v1143_v63 = vmax.f32 %v704_v53, 0.0  ;;  %v1147_v48 = vmax.f32 %v930_v40, 0.0 }
 0x11c   : > { %v1144_v13 = vmax.f32 %v706_v62, 0.0  ;;  %v1148_v51 = vmax.f32 %v932_v46, 0.0 }
 0x11d   : > { %v1239_v3 = vpack.c.bf16 %v1143_v63, %v1135_v2  ;;  %v4037_v58 = vpack.c.bf16 %v1147_v48, %v1139_v39 }
 0x11e   : > { %v1240_v17 = vpack.c.bf16 %v1144_v13, %v1136_v12  ;;  %v709_v18 = vpop.f32.mrb[16].mxu1  ;;  %v4040_v60 = vpack.c.bf16 %v1148_v51, %v1140_v45  ;;  %v935_v61 = vpop.f32.mrb[16].mxu0 }
 0x11f   : > { %v710_v20 = vadd.f32 %v709_v18, %v3973_v8  ;;  %v711_v21 = vpop.f32.mrb[17].mxu1  ;;  %v936_v1 = vadd.f32 %v935_v61, %v3987_v50  ;;  %v937_v2 = vpop.f32.mrb[17].mxu0 }
 0x120   : > { %v712_v23 = vadd.f32 %v711_v21, %v3978_v33  ;;  %v713_v5 = vpop.f32.mrb[18].mxu1  ;;  %2121 = vmatprep.mubr.bf16.mxu1 %v1240_v17  ;;  %v938_v9 = vadd.f32 %v937_v2, %v3990_v52  ;;  %v939_v10 = vpop.f32.mrb[18].mxu0 }
 0x121   : > { %v714_v27 = vadd.f32 %v713_v5, %v3973_v8  ;;  %v715_v7 = vpop.f32.mrb[19].mxu1  ;;  %2122 = vmatmul.mubr.bf16.gmra.mrb[108].mxu1 %v1239_v3  ;;  %v1151_v37 = vmax.f32 %v710_v20, 0.0  ;;  %v1155_v13 = vmax.f32 %v936_v1, 0.0  ;;  %v940_v14 = vadd.f32 %v939_v10, %v3987_v50  ;;  %v941_v15 = vpop.f32.mrb[19].mxu0 }
 0x122   : > { %v716_v34 = vadd.f32 %v715_v7, %v3978_v33  ;;  %v1152_v43 = vmax.f32 %v712_v23, 0.0  ;;  %v1156_v17 = vmax.f32 %v938_v9, 0.0  ;;  %v942_v18 = vadd.f32 %v941_v15, %v3990_v52 }
 0x123   : > { %v1159_v38 = vmax.f32 %v714_v27, 0.0  ;;  %v1163_v20 = vmax.f32 %v940_v14, 0.0 }
 0x124   : > { %v1160_v44 = vmax.f32 %v716_v34, 0.0  ;;  %v1164_v5 = vmax.f32 %v942_v18, 0.0 }
 0x125   : > { %v1247_v47 = vpack.c.bf16 %v1159_v38, %v1151_v37  ;;  %v4049_v7 = vpack.c.bf16 %v1163_v20, %v1155_v13 }
 0x126   : > { %v1248_v49 = vpack.c.bf16 %v1160_v44, %v1152_v43  ;;  %v719_v41 = vpop.f32.mrb[20].mxu1  ;;  %v4052_v34 = vpack.c.bf16 %v1164_v5, %v1156_v17  ;;  %v945_v35 = vpop.f32.mrb[20].mxu0 }
 0x127   : > { %v720_v55 = vadd.f32 %v719_v41, %v3973_v8  ;;  %v721_v56 = vpop.f32.mrb[21].mxu1  ;;  %v946_v38 = vadd.f32 %v945_v35, %v3987_v50  ;;  %v947_v39 = vpop.f32.mrb[21].mxu0 }
 0x128   : > { %v722_v53 = vadd.f32 %v721_v56, %v3978_v33  ;;  %v723_v59 = vpop.f32.mrb[22].mxu1  ;;  %2131 = vmatprep.mubr.bf16.mxu1 %v1248_v49  ;;  %v948_v42 = vadd.f32 %v947_v39, %v3990_v52  ;;  %v949_v43 = vpop.f32.mrb[22].mxu0 }
 0x129   : > { %v724_v62 = vadd.f32 %v723_v59, %v3973_v8  ;;  %v725_v0 = vpop.f32.mrb[23].mxu1  ;;  %2132 = vmatmul.mubr.bf16.gmra.mrb[112].mxu1 %v1247_v47  ;;  %v1167_v11 = vmax.f32 %v720_v55, 0.0  ;;  %v1171_v46 = vmax.f32 %v946_v38, 0.0  ;;  %v950_v47 = vadd.f32 %v949_v43, %v3987_v50  ;;  %v951_v48 = vpop.f32.mrb[23].mxu0 }
 0x12a   : > { %v726_v63 = vadd.f32 %v725_v0, %v3978_v33  ;;  %v1168_v3 = vmax.f32 %v722_v53, 0.0  ;;  %v1172_v51 = vmax.f32 %v948_v42, 0.0  ;;  %v952_v55 = vadd.f32 %v951_v48, %v3990_v52 }
 0x12b   : > { %v1175_v12 = vmax.f32 %v724_v62, 0.0  ;;  %v1179_v53 = vmax.f32 %v950_v47, 0.0  ;;  %v340_v62 = vsub.s32 2, %v3961_v29  ;;  %v344_v0 = vsub.s32 3, %v3961_v29 }
 0x12c   : > { %v1176_v16 = vmax.f32 %v726_v63, 0.0  ;;  %v1180_v1 = vmax.f32 %v952_v55, 0.0 }
 0x12d   : > { %v1255_v19 = vpack.c.bf16 %v1175_v12, %v1167_v11  ;;  %v4063_v9 = vpack.c.bf16 %v1179_v53, %v1171_v46  ;;  %v4072_v18 = vrot.slane %v3967_v31, %v340_v62 }
 0x12e   : > { %v1256_v21 = vpack.c.bf16 %v1176_v16, %v1168_v3  ;;  %v729_v23 = vpop.f32.mrb[24].mxu1  ;;  %v4066_v12 = vpack.c.bf16 %v1180_v1, %v1172_v51  ;;  %v955_v13 = vpop.f32.mrb[24].mxu0 }
 0x12f   : > { %v730_v26 = vadd.f32 %v729_v23, %v3973_v8  ;;  %v731_v27 = vpop.f32.mrb[25].mxu1  ;;  %v956_v3 = vadd.f32 %v955_v13, %v3987_v50  ;;  %v957_v16 = vpop.f32.mrb[25].mxu0 }
 0x130   : > { %v732_v6 = vadd.f32 %v731_v27, %v3978_v33  ;;  %v733_v28 = vpop.f32.mrb[26].mxu1  ;;  %2141 = vmatprep.mubr.bf16.mxu1 %v1256_v21  ;;  %v958_v20 = vadd.f32 %v957_v16, %v3990_v52  ;;  %v959_v21 = vpop.f32.mrb[26].mxu0 }
 0x131   : > { %v734_v36 = vadd.f32 %v733_v28, %v3973_v8  ;;  %v735_v37 = vpop.f32.mrb[27].mxu1  ;;  %2142 = vmatmul.mubr.bf16.gmra.mrb[116].mxu1 %v1255_v19  ;;  %v1183_v44 = vmax.f32 %v730_v26, 0.0  ;;  %v4075_v19 = vrot.slane %v3967_v31, %v344_v0  ;;  %v1187_v26 = vmax.f32 %v956_v3, 0.0  ;;  %v961_v27 = vpop.f32.mrb[27].mxu0 }
 0x132   : > { %v736_v40 = vadd.f32 %v735_v37, %v3978_v33  ;;  %v1184_v49 = vmax.f32 %v732_v6, 0.0  ;;  %v1188_v35 = vmax.f32 %v958_v20, 0.0 }
 0x133   : > { %v1191_v45 = vmax.f32 %v734_v36, 0.0 }
 0x134   : > { %v1192_v41 = vmax.f32 %v736_v40, 0.0 }
 0x135   : > { %v1263_v56 = vpack.c.bf16 %v1191_v45, %v1183_v44 }
 0x136   : > { %v1264_v59 = vpack.c.bf16 %v1192_v41, %v1184_v49  ;;  %v739_v61 = vpop.f32.mrb[28].mxu1  ;;  %v965_v48 = vpop.f32.mrb[28].mxu0 }
 0x137   : > { %v740_v2 = vadd.f32 %v739_v61, %v3973_v8  ;;  %v741_v63 = vpop.f32.mrb[29].mxu1  ;;  %v966_v51 = vadd.f32 %v965_v48, %v3987_v50  ;;  %v967_v55 = vpop.f32.mrb[29].mxu0 }
 0x138   : > { %v742_v10 = vadd.f32 %v741_v63, %v3978_v33  ;;  %v743_v11 = vpop.f32.mrb[30].mxu1  ;;  %2151 = vmatprep.mubr.bf16.mxu1 %v1264_v59  ;;  %v968_v53 = vadd.f32 %v967_v55, %v3990_v52  ;;  %v969_v59 = vpop.f32.mrb[30].mxu0 }
 0x139   : > { %v744_v14 = vadd.f32 %v743_v11, %v3973_v8  ;;  %v745_v15 = vpop.f32.mrb[31].mxu1  ;;  %2152 = vmatmul.mubr.bf16.gmra.mrb[120].mxu1 %v1263_v56  ;;  %v1199_v23 = vmax.f32 %v740_v2, 0.0  ;;  %v960_v8 = vadd.f32 %v959_v21, %v3987_v50  ;;  %v1203_v0 = vmax.f32 %v966_v51, 0.0  ;;  %v971_v2 = vpop.f32.mrb[31].mxu0 }
 0x13a   : > { %v746_v17 = vadd.f32 %v745_v15, %v3978_v33  ;;  %v1200_v6 = vmax.f32 %v742_v10, 0.0  ;;  %v962_v33 = vadd.f32 %v961_v27, %v3990_v52  ;;  %v970_v1 = vadd.f32 %v969_v59, %v3987_v50  ;;  %v3223_v50 = vld [vmem:[%s4634_s3 + $0x214] ss:$8 sps:$4 sm:$0xff]   ;;  %v3227_v59 = vld [vmem:[%s4634_s3 + $0x230] ss:$8 sps:$4 sm:$0xff]  }
 0x13b   : > { %v1207_v5 = vmax.f32 %v744_v14, 0.0  ;;  %v1195_v37 = vmax.f32 %v960_v8, 0.0  ;;  %v1204_v11 = vmax.f32 %v968_v53, 0.0  ;;  %v972_v13 = vadd.f32 %v971_v2, %v3990_v52 }
 0x13c   : > { %v1208_v28 = vmax.f32 %v746_v17, 0.0  ;;  %v1196_v40 = vmax.f32 %v962_v33, 0.0  ;;  %v1211_v15 = vmax.f32 %v970_v1, 0.0  ;;  %v3218_v17 = vld [vmem:[%s4634_s3 + $0x200] ss:$8 sps:$4 sm:$0xff]  }
 0x13d   : > { %v1271_v36 = vpack.c.bf16 %v1207_v5, %v1199_v23  ;;  %v4081_v44 = vpack.c.bf16 %v1195_v37, %v1187_v26  ;;  %v1212_v20 = vmax.f32 %v972_v13, 0.0  ;;  %v3226_v37 = vld [vmem:[%s4634_s3 + $0x224] ss:$8 sps:$4 sm:$0xff]   ;;  %v3230_v13 = vld [vmem:[%s4634_s3 + $0x240] ss:$8 sps:$4 sm:$0xff]  }
 0x13e   : > { %v1272_v38 = vpack.c.bf16 %v1208_v28, %v1200_v6  ;;  %v782_v39 = vpop.f32.mrb[32].mxu1  ;;  %v4084_v47 = vpack.c.bf16 %v1196_v40, %v1188_v35  ;;  %v4099_v5 = vpack.c.bf16 %v1211_v15, %v1203_v0  ;;  %v3221_v35 = vld [vmem:[%s4634_s3 + $0x210] ss:$8 sps:$4 sm:$0xff]   ;;  %v3232_v0 = vld [vmem:[%s4634_s3 + $0x244] ss:$8 sps:$4 sm:$0xff]  }
 0x13f   : > { %v783_v42 = vadd.f32 %v782_v39, %v4072_v18  ;;  %v784_v43 = vpop.f32.mrb[33].mxu1  ;;  %v4102_v8 = vpack.c.bf16 %v1212_v20, %v1204_v11 }
 0x140   : > { %v785_v45 = vadd.f32 %v784_v43, %v4075_v19  ;;  %v786_v46 = vpop.f32.mrb[34].mxu1  ;;  %2161 = vmatprep.mubr.bf16.mxu1 %v1272_v38 }
 0x141   : > { %v787_v49 = vadd.f32 %v786_v46, %v4072_v18  ;;  %v788_v41 = vpop.f32.mrb[35].mxu1  ;;  %2162 = vmatmul.mubr.bf16.gmra.mrb[124].mxu1 %v1271_v36  ;;  %v1089_v61 = vmax.f32 %v783_v42, 0.0 }
 0x142   : > { %v789_v56 = vadd.f32 %v788_v41, %v4075_v19  ;;  %v1090_v63 = vmax.f32 %v785_v45, 0.0  ;;  %v3224_v45 = vld [vmem:[%s4634_s3 + $0x220] ss:$8 sps:$4 sm:$0xff]  }
 0x143   : > { %v1097_v62 = vmax.f32 %v787_v49, 0.0  ;;  %v3229_v49 = vld [vmem:[%s4634_s3 + $0x234] ss:$8 sps:$4 sm:$0xff]  }
 0x144   : > { %v1098_v10 = vmax.f32 %v789_v56, 0.0 }
 0x145   : > { %v1217_v14 = vpack.c.bf16 %v1097_v62, %v1089_v61 }
 0x146   : > { %v1218_v3 = vpack.c.bf16 %v1098_v10, %v1090_v63  ;;  %v792_v16 = vpop.f32.mrb[36].mxu1 }
 0x147   : > { %v793_v21 = vadd.f32 %v792_v16, %v4072_v18  ;;  %v794_v23 = vpop.f32.mrb[37].mxu1 }
 0x148   : > { %v795_v52 = vadd.f32 %v794_v23, %v4075_v19  ;;  %v796_v26 = vpop.f32.mrb[38].mxu1  ;;  %2204 = vmatprep.mubr.bf16.mxu0 %v1218_v3  ;;  %v3235_v3 = vld [vmem:[%s4634_s3 + $0x254] ss:$8 sps:$4 sm:$0xff]  }
 0x149   : > { %v797_v27 = vadd.f32 %v796_v26, %v4072_v18  ;;  %v798_v6 = vpop.f32.mrb[39].mxu1  ;;  %2205 = vmatmul.mubr.bf16.vlgmr.msra.gmra.mrb[32].mxu0 %v1217_v14  ;;  %v1105_v33 = vmax.f32 %v793_v21, 0.0 }
 0x14a   : > { %v799_v28 = vadd.f32 %v798_v6, %v4075_v19  ;;  %2286 = vmatpush1.bf16.msra.mxu0 %v3218_v17  ;;  %v1106_v38 = vmax.f32 %v795_v52, 0.0 }
 0x14b   : > { %v1113_v36 = vmax.f32 %v797_v27, 0.0  ;;  %2287 = vmatprep.subr.bf16.mxu0 %v3223_v50  ;;  %v3233_v50 = vld [vmem:[%s4634_s3 + $0x250] ss:$8 sps:$4 sm:$0xff]   ;;  %v3238_v27 = vld [vmem:[%s4634_s3 + $0x264] ss:$8 sps:$4 sm:$0xff]  }
 0x14c   : > { %v1114_v39 = vmax.f32 %v799_v28, 0.0 }
 0x14d   : > { %v1225_v40 = vpack.c.bf16 %v1113_v36, %v1105_v33 }
 0x14e   : > { %v1226_v42 = vpack.c.bf16 %v1114_v39, %v1106_v38  ;;  %v802_v43 = vpop.f32.mrb[40].mxu1  ;;  %2288 = vmatpush1.bf16.msra.mxu0 %v3221_v35 }
 0x14f   : > { %v803_v46 = vadd.f32 %v802_v43, %v4072_v18  ;;  %v804_v48 = vpop.f32.mrb[41].mxu1  ;;  %2289 = vmatprep.subr.bf16.mxu0 %v3226_v37  ;;  %v3236_v37 = vld [vmem:[%s4634_s3 + $0x260] ss:$8 sps:$4 sm:$0xff]  }
 0x150   : > { %v805_v41 = vadd.f32 %v804_v48, %v4075_v19  ;;  %v806_v51 = vpop.f32.mrb[42].mxu1  ;;  %2214 = vmatprep.mubr.bf16.mxu0 %v1226_v42 }
 0x151   : > { %v807_v55 = vadd.f32 %v806_v51, %v4072_v18  ;;  %v808_v56 = vpop.f32.mrb[43].mxu1  ;;  %2215 = vmatmul.mubr.bf16.gmra.mrb[36].mxu0 %v1225_v40  ;;  %v1121_v61 = vmax.f32 %v803_v46, 0.0  ;;  %v3241_v40 = vld [vmem:[%s4634_s3 + $0x274] ss:$8 sps:$4 sm:$0xff]  }
 0x152   : > { %v809_v53 = vadd.f32 %v808_v56, %v4075_v19  ;;  %2290 = vmatpush1.bf16.msra.mxu0 %v3224_v45  ;;  %v1122_v1 = vmax.f32 %v805_v41, 0.0 }
 0x153   : > { %v1129_v62 = vmax.f32 %v807_v55, 0.0  ;;  %2291 = vmatprep.subr.bf16.mxu0 %v3229_v49  ;;  %v3239_v49 = vld [vmem:[%s4634_s3 + $0x270] ss:$8 sps:$4 sm:$0xff]   ;;  %v3244_v55 = vld [vmem:[%s4634_s3 + $0x284] ss:$8 sps:$4 sm:$0xff]  }
 0x154   : > { %v1130_v2 = vmax.f32 %v809_v53, 0.0 }
 0x155   : > { %v1233_v63 = vpack.c.bf16 %v1129_v62, %v1121_v61 }
 0x156   : > { %v1234_v10 = vpack.c.bf16 %v1130_v2, %v1122_v1  ;;  %v812_v11 = vpop.f32.mrb[44].mxu1  ;;  %2292 = vmatpush1.bf16.msra.mxu0 %v3227_v59 }
 0x157   : > { %v813_v14 = vadd.f32 %v812_v11, %v4072_v18  ;;  %v814_v15 = vpop.f32.mrb[45].mxu1  ;;  %2293 = vmatprep.subr.bf16.mxu0 %v3232_v0  ;;  %v3242_v0 = vld [vmem:[%s4634_s3 + $0x280] ss:$8 sps:$4 sm:$0xff]  }
 0x158   : > { %v815_v16 = vadd.f32 %v814_v15, %v4075_v19  ;;  %v816_v17 = vpop.f32.mrb[46].mxu1  ;;  %2224 = vmatprep.mubr.bf16.mxu0 %v1234_v10 }
 0x159   : > { %v817_v20 = vadd.f32 %v816_v17, %v4072_v18  ;;  %v818_v21 = vpop.f32.mrb[47].mxu1  ;;  %2225 = vmatmul.mubr.bf16.gmra.mrb[40].mxu0 %v1233_v63  ;;  %v1137_v52 = vmax.f32 %v813_v14, 0.0  ;;  %v3247_v63 = vld [vmem:[%s4634_s3 + $0x294] ss:$8 sps:$4 sm:$0xff]  }
 0x15a   : > { %v819_v23 = vadd.f32 %v818_v21, %v4075_v19  ;;  %2294 = vmatpush1.bf16.msra.mxu0 %v3230_v13  ;;  %v1138_v6 = vmax.f32 %v815_v16, 0.0 }
 0x15b   : > { %v1145_v26 = vmax.f32 %v817_v20, 0.0  ;;  %2295 = vmatprep.subr.bf16.mxu0 %v3235_v3  ;;  %v3245_v3 = vld [vmem:[%s4634_s3 + $0x290] ss:$8 sps:$4 sm:$0xff]   ;;  %v3250_v20 = vld [vmem:[%s4634_s3 + $0x2a4] ss:$8 sps:$4 sm:$0xff]  }
 0x15c   : > { %v1146_v28 = vmax.f32 %v819_v23, 0.0 }
 0x15d   : > { %v1241_v35 = vpack.c.bf16 %v1145_v26, %v1137_v52 }
 0x15e   : > { %v1242_v33 = vpack.c.bf16 %v1146_v28, %v1138_v6  ;;  %v822_v36 = vpop.f32.mrb[48].mxu1  ;;  %2296 = vmatpush1.bf16.msra.mxu0 %v3233_v50 }
 0x15f   : > { %v823_v38 = vadd.f32 %v822_v36, %v4072_v18  ;;  %v824_v39 = vpop.f32.mrb[49].mxu1  ;;  %2297 = vmatprep.subr.bf16.mxu0 %v3238_v27  ;;  %v3248_v27 = vld [vmem:[%s4634_s3 + $0x2a0] ss:$8 sps:$4 sm:$0xff]  }
 0x160   : > { %v825_v42 = vadd.f32 %v824_v39, %v4075_v19  ;;  %v826_v43 = vpop.f32.mrb[50].mxu1  ;;  %2234 = vmatprep.mubr.bf16.mxu0 %v1242_v33 }
 0x161   : > { %v827_v45 = vadd.f32 %v826_v43, %v4072_v18  ;;  %v828_v46 = vpop.f32.mrb[51].mxu1  ;;  %2235 = vmatmul.mubr.bf16.gmra.mrb[44].mxu0 %v1241_v35  ;;  %v1153_v41 = vmax.f32 %v823_v38, 0.0  ;;  %v3253_v35 = vld [vmem:[%s4634_s3 + $0x2b4] ss:$8 sps:$4 sm:$0xff]  }
 0x162   : > { %v829_v48 = vadd.f32 %v828_v46, %v4075_v19  ;;  %2298 = vmatpush1.bf16.msra.mxu0 %v3236_v37  ;;  %v1154_v56 = vmax.f32 %v825_v42, 0.0 }
 0x163   : > { %v1161_v51 = vmax.f32 %v827_v45, 0.0  ;;  %2299 = vmatprep.subr.bf16.mxu0 %v3241_v40  ;;  %v3251_v40 = vld [vmem:[%s4634_s3 + $0x2b0] ss:$8 sps:$4 sm:$0xff]   ;;  %v3256_v45 = vld [vmem:[%s4634_s3 + $0x2c4] ss:$8 sps:$4 sm:$0xff]  }
 0x164   : > { %v1162_v53 = vmax.f32 %v829_v48, 0.0 }
 0x165   : > { %v1249_v59 = vpack.c.bf16 %v1161_v51, %v1153_v41 }
 0x166   : > { %v1250_v61 = vpack.c.bf16 %v1162_v53, %v1154_v56  ;;  %v832_v62 = vpop.f32.mrb[52].mxu1  ;;  %2300 = vmatpush1.bf16.msra.mxu0 %v3239_v49 }
 0x167   : > { %v833_v1 = vadd.f32 %v832_v62, %v4072_v18  ;;  %v834_v2 = vpop.f32.mrb[53].mxu1  ;;  %2301 = vmatprep.subr.bf16.mxu0 %v3244_v55  ;;  %v3254_v55 = vld [vmem:[%s4634_s3 + $0x2c0] ss:$8 sps:$4 sm:$0xff]  }
 0x168   : > { %v835_v10 = vadd.f32 %v834_v2, %v4075_v19  ;;  %v836_v11 = vpop.f32.mrb[54].mxu1  ;;  %2244 = vmatprep.mubr.bf16.mxu0 %v1250_v61  ;;  %v356_v61 = vsub.s32 6, %v3961_v29 }
 0x169   : > { %v837_v13 = vadd.f32 %v836_v11, %v4072_v18  ;;  %v838_v14 = vpop.f32.mrb[55].mxu1  ;;  %2245 = vmatmul.mubr.bf16.gmra.mrb[48].mxu0 %v1249_v59  ;;  %v1169_v16 = vmax.f32 %v833_v1, 0.0  ;;  %v3259_v59 = vld [vmem:[%s4634_s3 + $0x2d4] ss:$8 sps:$4 sm:$0xff]   ;;  %v360_v1 = vsub.s32 7, %v3961_v29 }
 0x16a   : > { %v839_v15 = vadd.f32 %v838_v14, %v4075_v19  ;;  %2302 = vmatpush1.bf16.msra.mxu0 %v3242_v0  ;;  %v1170_v21 = vmax.f32 %v835_v10, 0.0  ;;  %v3257_v11 = vld [vmem:[%s4634_s3 + $0x2d0] ss:$8 sps:$4 sm:$0xff]  }
 0x16b   : > { %v1177_v17 = vmax.f32 %v837_v13, 0.0  ;;  %2303 = vmatprep.subr.bf16.mxu0 %v3247_v63 }
 0x16c   : > { %v1178_v23 = vmax.f32 %v839_v15, 0.0  ;;  %v3262_v15 = vld [vmem:[%s4634_s3 + $0x2e4] ss:$8 sps:$4 sm:$0xff]  }
 0x16d   : > { %v1257_v50 = vpack.c.bf16 %v1177_v17, %v1169_v16  ;;  %v4214_v17 = vrot.slane %v3967_v31, %v360_v1 }
 0x16e   : > { %v1258_v52 = vpack.c.bf16 %v1178_v23, %v1170_v21  ;;  %v842_v26 = vpop.f32.mrb[56].mxu1  ;;  %2304 = vmatpush1.bf16.msra.mxu0 %v3245_v3  ;;  %v4211_v3 = vrot.slane %v3967_v31, %v356_v61  ;;  %v3260_v21 = vld [vmem:[%s4634_s3 + $0x2e0] ss:$8 sps:$4 sm:$0xff]  }
 0x16f   : > { %v843_v6 = vadd.f32 %v842_v26, %v4072_v18  ;;  %v844_v28 = vpop.f32.mrb[57].mxu1  ;;  %2305 = vmatprep.subr.bf16.mxu0 %v3250_v20 }
 0x170   : > { %v845_v33 = vadd.f32 %v844_v28, %v4075_v19  ;;  %v846_v36 = vpop.f32.mrb[58].mxu1  ;;  %2254 = vmatprep.mubr.bf16.mxu0 %v1258_v52 }
 0x171   : > { %v847_v37 = vadd.f32 %v846_v36, %v4072_v18  ;;  %v848_v38 = vpop.f32.mrb[59].mxu1  ;;  %2255 = vmatmul.mubr.bf16.gmra.mrb[52].mxu0 %v1257_v50  ;;  %v1185_v42 = vmax.f32 %v843_v6, 0.0  ;;  %v3265_v50 = vld [vmem:[%s4634_s3 + $0x2f4] ss:$8 sps:$4 sm:$0xff]  }
 0x172   : > { %v849_v39 = vadd.f32 %v848_v38, %v4075_v19  ;;  %2306 = vmatpush1.bf16.msra.mxu0 %v3248_v27  ;;  %v1186_v46 = vmax.f32 %v845_v33, 0.0  ;;  %v3263_v33 = vld [vmem:[%s4634_s3 + $0x2f0] ss:$8 sps:$4 sm:$0xff]   ;;  %v3268_v38 = vld [vmem:[%s4634_s3 + $0x304] ss:$8 sps:$4 sm:$0xff]  }
 0x173   : > { %v1193_v43 = vmax.f32 %v847_v37, 0.0  ;;  %2307 = vmatprep.subr.bf16.mxu0 %v3253_v35 }
 0x174   : > { %v1194_v48 = vmax.f32 %v849_v39, 0.0 }
 0x175   : > { %v1265_v49 = vpack.c.bf16 %v1193_v43, %v1185_v42  ;;  %v3266_v43 = vld [vmem:[%s4634_s3 + $0x300] ss:$8 sps:$4 sm:$0xff]  }
 0x176   : > { %v1266_v41 = vpack.c.bf16 %v1194_v48, %v1186_v46  ;;  %v852_v51 = vpop.f32.mrb[60].mxu1  ;;  %2308 = vmatpush1.bf16.msra.mxu0 %v3251_v40  ;;  %v3271_v46 = vld [vmem:[%s4634_s3 + $0x314] ss:$8 sps:$4 sm:$0xff]  }
 0x177   : > { %v853_v56 = vadd.f32 %v852_v51, %v4072_v18  ;;  %v854_v53 = vpop.f32.mrb[61].mxu1  ;;  %2309 = vmatprep.subr.bf16.mxu0 %v3256_v45 }
 0x178   : > { %v855_v62 = vadd.f32 %v854_v53, %v4075_v19  ;;  %v856_v0 = vpop.f32.mrb[62].mxu1  ;;  %2264 = vmatprep.mubr.bf16.mxu0 %v1266_v41 }
 0x179   : > { %v857_v2 = vadd.f32 %v856_v0, %v4072_v18  ;;  %v858_v63 = vpop.f32.mrb[63].mxu1  ;;  %2265 = vmatmul.mubr.bf16.gmra.mrb[56].mxu0 %v1265_v49  ;;  %v1201_v13 = vmax.f32 %v853_v56, 0.0  ;;  %v3274_v0 = vld [vmem:[%s4634_s3 + $0x324] ss:$8 sps:$4 sm:$0xff]  }
 0x17a   : > { %v859_v10 = vadd.f32 %v858_v63, %v4075_v19  ;;  %2310 = vmatpush1.bf16.msra.mxu0 %v3254_v55  ;;  %v1202_v18 = vmax.f32 %v855_v62, 0.0  ;;  %v3272_v63 = vld [vmem:[%s4634_s3 + $0x320] ss:$8 sps:$4 sm:$0xff]  }
 0x17b   : > { %v1209_v14 = vmax.f32 %v857_v2, 0.0  ;;  %2311 = vmatprep.subr.bf16.mxu0 %v3259_v59  ;;  %v3269_v59 = vld [vmem:[%s4634_s3 + $0x310] ss:$8 sps:$4 sm:$0xff]  }
 0x17c   : > { %v1210_v16 = vmax.f32 %v859_v10, 0.0 }
 0x17d   : > { %v1273_v19 = vpack.c.bf16 %v1209_v14, %v1201_v13 }
 0x17e   : > { %v1274_v20 = vpack.c.bf16 %v1210_v16, %v1202_v18  ;;  %2312 = vmatpush1.bf16.msra.mxu0 %v3257_v11  ;;  %v1008_v23 = vpop.f32.mrb[64].mxu1  ;;  %v3277_v11 = vld [vmem:[%s4634_s3 + $0x334] ss:$8 sps:$4 sm:$0xff]  }
 0x17f   : > { %2313 = vmatprep.subr.bf16.mxu0 %v3262_v15  ;;  %v1009_v52 = vadd.f32 %v1008_v23, %v4211_v3  ;;  %v1010_v26 = vpop.f32.mrb[65].mxu1 }
 0x180   : > { %2274 = vmatprep.mubr.bf16.mxu0 %v1274_v20  ;;  %v1011_v31 = vadd.f32 %v1010_v26, %v4214_v17  ;;  %v1012_v27 = vpop.f32.mrb[66].mxu1 }
 0x181   : > { %2275 = vmatmul.mubr.bf16.gmra.mrb[60].mxu0 %v1273_v19  ;;  %v1093_v6 = vmax.f32 %v1009_v52, 0.0  ;;  %v1013_v28 = vadd.f32 %v1012_v27, %v4211_v3  ;;  %v1014_v35 = vpop.f32.mrb[67].mxu1  ;;  %v3280_v52 = vld [vmem:[%s4634_s3 + $0x344] ss:$8 sps:$4 sm:$0xff]   ;;  %v3278_v27 = vld [vmem:[%s4634_s3 + $0x340] ss:$8 sps:$4 sm:$0xff]  }
 0x182   : > { %2314 = vmatpush1.bf16.msra.mxu0 %v3260_v21  ;;  %2317 = vmatprep.mubr.bf16.mxu0 %v4004_v24  ;;  %v1094_v36 = vmax.f32 %v1011_v31, 0.0  ;;  %v1015_v37 = vadd.f32 %v1014_v35, %v4214_v17  ;;  %v3275_v21 = vld [vmem:[%s4634_s3 + $0x330] ss:$8 sps:$4 sm:$0xff]  }
 0x183   : > { %2315 = vmatprep.subr.bf16.mxu0 %v3265_v50  ;;  %v1101_v39 = vmax.f32 %v1013_v28, 0.0  ;;  %v3283_v28 = vld [vmem:[%s4634_s3 + $0x354] ss:$8 sps:$4 sm:$0xff]  }
 0x184   : > { %v1102_v40 = vmax.f32 %v1015_v37, 0.0 }
 0x185   : > { %v4233_v42 = vpack.c.bf16 %v1101_v39, %v1093_v6 }
 0x186   : > { %2316 = vmatpush1.bf16.msra.mxu0 %v3263_v33  ;;  %v4238_v45 = vpack.c.bf16 %v1102_v40, %v1094_v36  ;;  %v1018_v24 = vpop.f32.mrb[68].mxu1 }
 0x187   : > { %2398 = vmatprep.subr.bf16.mxu0 %v3268_v38  ;;  %v1019_v48 = vadd.f32 %v1018_v24, %v4211_v3  ;;  %v1020_v49 = vpop.f32.mrb[69].mxu1 }
 0x188   : > { %v1021_v41 = vadd.f32 %v1020_v49, %v4214_v17  ;;  %v1022_v51 = vpop.f32.mrb[70].mxu1 }
 0x189   : > { %2318 = vmatmul.mubr.bf16.vlgmr.msra.gmra.mrb[32].mxu0 %v4001_v4  ;;  %v1109_v55 = vmax.f32 %v1019_v48, 0.0  ;;  %v1023_v56 = vadd.f32 %v1022_v51, %v4211_v3  ;;  %v1024_v53 = vpop.f32.mrb[71].mxu1  ;;  %v3286_v48 = vld [vmem:[%s4634_s3 + $0x364] ss:$8 sps:$4 sm:$0xff]   ;;  %v3284_v51 = vld [vmem:[%s4634_s3 + $0x360] ss:$8 sps:$4 sm:$0xff]  }
 0x18a   : > { %2399 = vmatpush1.bf16.msra.mxu0 %v3266_v43  ;;  %2327 = vmatprep.mubr.bf16.mxu0 %v4016_v57  ;;  %v1110_v61 = vmax.f32 %v1021_v41, 0.0  ;;  %v1025_v62 = vadd.f32 %v1024_v53, %v4214_v17  ;;  %v3281_v43 = vld [vmem:[%s4634_s3 + $0x350] ss:$8 sps:$4 sm:$0xff]  }
 0x18b   : > { %2400 = vmatprep.subr.bf16.mxu0 %v3271_v46  ;;  %v1117_v4 = vmax.f32 %v1023_v56, 0.0  ;;  %v3289_v56 = vld [vmem:[%s4634_s3 + $0x374] ss:$8 sps:$4 sm:$0xff]  }
 0x18c   : > { %v1118_v1 = vmax.f32 %v1025_v62, 0.0 }
 0x18d   : > { %v4255_v2 = vpack.c.bf16 %v1117_v4, %v1109_v55 }
 0x18e   : > { %2401 = vmatpush1.bf16.msra.mxu0 %v3269_v59  ;;  %v4260_v10 = vpack.c.bf16 %v1118_v1, %v1110_v61  ;;  %v1028_v57 = vpop.f32.mrb[72].mxu1 }
 0x18f   : > { %2402 = vmatprep.subr.bf16.mxu0 %v3274_v0  ;;  %v1029_v13 = vadd.f32 %v1028_v57, %v4211_v3  ;;  %v1030_v14 = vpop.f32.mrb[73].mxu1 }
 0x190   : > { %v1031_v15 = vadd.f32 %v1030_v14, %v4214_v17  ;;  %v1032_v18 = vpop.f32.mrb[74].mxu1 }
 0x191   : > { %2328 = vmatmul.mubr.bf16.gmra.mrb[36].mxu0 %v4013_v54  ;;  %v1125_v16 = vmax.f32 %v1029_v13, 0.0  ;;  %v1033_v19 = vadd.f32 %v1032_v18, %v4211_v3  ;;  %v1034_v20 = vpop.f32.mrb[75].mxu1  ;;  %v3292_v13 = vld [vmem:[%s4634_s3 + $0x384] ss:$8 sps:$4 sm:$0xff]   ;;  %v3290_v18 = vld [vmem:[%s4634_s3 + $0x380] ss:$8 sps:$4 sm:$0xff]  }
 0x192   : > { %2403 = vmatpush1.bf16.msra.mxu0 %v3272_v63  ;;  %2337 = vmatprep.mubr.bf16.mxu0 %v4028_v25  ;;  %v1126_v23 = vmax.f32 %v1031_v15, 0.0  ;;  %v1035_v50 = vadd.f32 %v1034_v20, %v4214_v17  ;;  %v3287_v63 = vld [vmem:[%s4634_s3 + $0x370] ss:$8 sps:$4 sm:$0xff]  }
 0x193   : > { %2404 = vmatprep.subr.bf16.mxu0 %v3277_v11  ;;  %v1133_v54 = vmax.f32 %v1033_v19, 0.0  ;;  %v3295_v19 = vld [vmem:[%s4634_s3 + $0x394] ss:$8 sps:$4 sm:$0xff]  }
 0x194   : > { %v1134_v26 = vmax.f32 %v1035_v50, 0.0 }
 0x195   : > { %v4277_v31 = vpack.c.bf16 %v1133_v54, %v1125_v16 }
 0x196   : > { %2405 = vmatpush1.bf16.msra.mxu0 %v3275_v21  ;;  %v4282_v6 = vpack.c.bf16 %v1134_v26, %v1126_v23  ;;  %v1038_v25 = vpop.f32.mrb[76].mxu1 }
 0x197   : > { %2406 = vmatprep.subr.bf16.mxu0 %v3280_v52  ;;  %v1039_v35 = vadd.f32 %v1038_v25, %v4211_v3  ;;  %v1040_v33 = vpop.f32.mrb[77].mxu1 }
 0x198   : > { %v1041_v36 = vadd.f32 %v1040_v33, %v4214_v17  ;;  %v1042_v37 = vpop.f32.mrb[78].mxu1 }
 0x199   : > { %2338 = vmatmul.mubr.bf16.gmra.mrb[40].mxu0 %v4025_v22  ;;  %v1141_v38 = vmax.f32 %v1039_v35, 0.0  ;;  %v1043_v39 = vadd.f32 %v1042_v37, %v4211_v3  ;;  %v1044_v40 = vpop.f32.mrb[79].mxu1  ;;  %v3298_v35 = vld [vmem:[%s4634_s3 + $0x3a4] ss:$8 sps:$4 sm:$0xff]   ;;  %v3296_v37 = vld [vmem:[%s4634_s3 + $0x3a0] ss:$8 sps:$4 sm:$0xff]  }
 0x19a   : > { %2407 = vmatpush1.bf16.msra.mxu0 %v3278_v27  ;;  %2347 = vmatprep.mubr.bf16.mxu0 %v4040_v60  ;;  %v1142_v24 = vmax.f32 %v1041_v36, 0.0  ;;  %v1045_v46 = vadd.f32 %v1044_v40, %v4214_v17  ;;  %v3293_v27 = vld [vmem:[%s4634_s3 + $0x390] ss:$8 sps:$4 sm:$0xff]  }
 0x19b   : > { %2408 = vmatprep.subr.bf16.mxu0 %v3283_v28  ;;  %v1149_v22 = vmax.f32 %v1043_v39, 0.0  ;;  %v3301_v39 = vld [vmem:[%s4634_s3 + $0x3b4] ss:$8 sps:$4 sm:$0xff]  }
 0x19c   : > { %v1150_v49 = vmax.f32 %v1045_v46, 0.0 }
 0x19d   : > { %v4299_v41 = vpack.c.bf16 %v1149_v22, %v1141_v38 }
 0x19e   : > { %2409 = vmatpush1.bf16.msra.mxu0 %v3281_v43  ;;  %v4304_v55 = vpack.c.bf16 %v1150_v49, %v1142_v24  ;;  %v1048_v60 = vpop.f32.mrb[80].mxu1 }
 0x19f   : > { %2410 = vmatprep.subr.bf16.mxu0 %v3286_v48  ;;  %v1049_v53 = vadd.f32 %v1048_v60, %v4211_v3  ;;  %v1050_v59 = vpop.f32.mrb[81].mxu1 }
 0x1a0   : > { %v1051_v61 = vadd.f32 %v1050_v59, %v4214_v17  ;;  %v1052_v62 = vpop.f32.mrb[82].mxu1 }
 0x1a1   : > { %2348 = vmatmul.mubr.bf16.gmra.mrb[44].mxu0 %v4037_v58  ;;  %v1157_v0 = vmax.f32 %v1049_v53, 0.0  ;;  %v1053_v4 = vadd.f32 %v1052_v62, %v4211_v3  ;;  %v1054_v1 = vpop.f32.mrb[83].mxu1  ;;  %v3304_v53 = vld [vmem:[%s4634_s3 + $0x3c4] ss:$8 sps:$4 sm:$0xff]   ;;  %v3302_v62 = vld [vmem:[%s4634_s3 + $0x3c0] ss:$8 sps:$4 sm:$0xff]  }
 0x1a2   : > { %2411 = vmatpush1.bf16.msra.mxu0 %v3284_v51  ;;  %2357 = vmatprep.mubr.bf16.mxu0 %v4052_v34  ;;  %v1158_v57 = vmax.f32 %v1051_v61, 0.0  ;;  %v1055_v11 = vadd.f32 %v1054_v1, %v4214_v17  ;;  %v3299_v51 = vld [vmem:[%s4634_s3 + $0x3b0] ss:$8 sps:$4 sm:$0xff]  }
 0x1a3   : > { %2412 = vmatprep.subr.bf16.mxu0 %v3289_v56  ;;  %v1165_v58 = vmax.f32 %v1053_v4, 0.0 }
 0x1a4   : > { %v1166_v14 = vmax.f32 %v1055_v11, 0.0 }
 0x1a5   : > { %v4321_v15 = vpack.c.bf16 %v1165_v58, %v1157_v0 }
 0x1a6   : > { %2413 = vmatpush1.bf16.msra.mxu0 %v3287_v63  ;;  %v4326_v16 = vpack.c.bf16 %v1166_v14, %v1158_v57  ;;  %v1058_v34 = vpop.f32.mrb[84].mxu1 }
 0x1a7   : > { %2414 = vmatprep.subr.bf16.mxu0 %v3292_v13  ;;  %v1059_v20 = vadd.f32 %v1058_v34, %v4211_v3  ;;  %v1060_v21 = vpop.f32.mrb[85].mxu1 }
 0x1a8   : > { %v1061_v23 = vadd.f32 %v1060_v21, %v4214_v17  ;;  %v1062_v50 = vpop.f32.mrb[86].mxu1 }
 0x1a9   : > { %2358 = vmatmul.mubr.bf16.gmra.mrb[48].mxu0 %v4049_v7  ;;  %v1173_v52 = vmax.f32 %v1059_v20, 0.0  ;;  %v1063_v54 = vadd.f32 %v1062_v50, %v4211_v3  ;;  %v1064_v26 = vpop.f32.mrb[87].mxu1  ;;  %v3310_v20 = vld [vmem:[%s4634_s3 + $0x3e4] ss:$8 sps:$4 sm:$0xff]  }
 0x1aa   : > { %2415 = vmatpush1.bf16.msra.mxu0 %v3290_v18  ;;  %2367 = vmatprep.mubr.bf16.mxu0 %v4066_v12  ;;  %v1174_v25 = vmax.f32 %v1061_v23, 0.0  ;;  %v1065_v28 = vadd.f32 %v1064_v26, %v4214_v17  ;;  %v3305_v18 = vld [vmem:[%s4634_s3 + $0x3d0] ss:$8 sps:$4 sm:$0xff]  }
 0x1ab   : > { %2416 = vmatprep.subr.bf16.mxu0 %v3295_v19  ;;  %v1181_v7 = vmax.f32 %v1063_v54, 0.0 }
 0x1ac   : > { %v1182_v33 = vmax.f32 %v1065_v28, 0.0 }
 0x1ad   : > { %v4343_v36 = vpack.c.bf16 %v1181_v7, %v1173_v52 }
 0x1ae   : > { %2417 = vmatpush1.bf16.msra.mxu0 %v3293_v27  ;;  %v4348_v38 = vpack.c.bf16 %v1182_v33, %v1174_v25  ;;  %v1068_v12 = vpop.f32.mrb[88].mxu1 }
 0x1af   : > { %2418 = vmatprep.subr.bf16.mxu0 %v3298_v35  ;;  %v1069_v40 = vadd.f32 %v1068_v12, %v4211_v3  ;;  %v1070_v43 = vpop.f32.mrb[89].mxu1 }
 0x1b0   : > { %v1071_v24 = vadd.f32 %v1070_v43, %v4214_v17  ;;  %v1072_v46 = vpop.f32.mrb[90].mxu1 }
 0x1b1   : > { %2368 = vmatmul.mubr.bf16.gmra.mrb[52].mxu0 %v4063_v9  ;;  %v1189_v48 = vmax.f32 %v1069_v40, 0.0  ;;  %v1073_v22 = vadd.f32 %v1072_v46, %v4211_v3  ;;  %v1074_v49 = vpop.f32.mrb[91].mxu1 }
 0x1b2   : > { %2419 = vmatpush1.bf16.msra.mxu0 %v3296_v37  ;;  %2377 = vmatprep.mubr.bf16.mxu0 %v4084_v47  ;;  %v1190_v60 = vmax.f32 %v1071_v24, 0.0  ;;  %v1075_v56 = vadd.f32 %v1074_v49, %v4214_v17  ;;  %v3307_v47 = vld [vmem:[%s4634_s3 + $0x3d4] ss:$8 sps:$4 sm:$0xff]  }
 0x1b3   : > { %2420 = vmatprep.subr.bf16.mxu0 %v3301_v39  ;;  %v1197_v9 = vmax.f32 %v1073_v22, 0.0 }
 0x1b4   : > { %v1198_v59 = vmax.f32 %v1075_v56, 0.0 }
 0x1b5   : > { %v4365_v61 = vpack.c.bf16 %v1197_v9, %v1189_v48 }
 0x1b6   : > { %2421 = vmatpush1.bf16.msra.mxu0 %v3299_v51  ;;  %v1270_v0 = vpack.c.bf16 %v1198_v59, %v1190_v60  ;;  %v1078_v4 = vpop.f32.mrb[92].mxu1  ;;  %v1407_v51 = vld [vmem:[%s269_s17] sm:$0x3] }
 0x1b7   : > { %2422 = vmatprep.subr.bf16.mxu0 %v3304_v53  ;;  %v1079_v1 = vadd.f32 %v1078_v4, %v4211_v3  ;;  %v1080_v63 = vpop.f32.mrb[93].mxu1  ;;  %v4466_v60 = vrot.slane %v1407_v51, %v332_v30  ;;  %v4470_v56 = vrot.slane %v1407_v51, %v336_v32 }
 0x1b8   : > { %v1081_v57 = vadd.f32 %v1080_v63, %v4214_v17  ;;  %v1082_v11 = vpop.f32.mrb[94].mxu1 }
 0x1b9   : > { %2378 = vmatmul.mubr.bf16.gmra.mrb[56].mxu0 %v4081_v44  ;;  %v1205_v13 = vmax.f32 %v1079_v1, 0.0  ;;  %v1083_v58 = vadd.f32 %v1082_v11, %v4211_v3  ;;  %v1084_v14 = vpop.f32.mrb[95].mxu1  ;;  %v3308_v3 = vld [vmem:[%s4634_s3 + $0x3e0] ss:$8 sps:$4 sm:$0xff]  }
 0x1ba   : > { %2423 = vmatpush1.bf16.msra.mxu0 %v3302_v62  ;;  %2387 = vmatprep.mubr.bf16.mxu0 %v4102_v8  ;;  %v1206_v34 = vmax.f32 %v1081_v57, 0.0  ;;  %v1085_v19 = vadd.f32 %v1084_v14, %v4214_v17  ;;  %v3313_v8 = vld [vmem:[%s4634_s3 + $0x3f4] ss:$8 sps:$4 sm:$0xff]   ;;  %v3311_v17 = vld [vmem:[%s4634_s3 + $0x3f0] ss:$8 sps:$4 sm:$0xff]  }
 0x1bb   : > { %2424 = vmatprep.subr.bf16.mxu0 %v3307_v47  ;;  %v1213_v44 = vmax.f32 %v1083_v58, 0.0 }
 0x1bc   : > { %v1214_v21 = vmax.f32 %v1085_v19, 0.0 }
 0x1bd   : > { %v1277_v23 = vpack.c.bf16 %v1213_v44, %v1205_v13 }
 0x1be   : > { %2425 = vmatpush1.bf16.msra.mxu0 %v3305_v18  ;;  %v1278_v50 = vpack.c.bf16 %v1214_v21, %v1206_v34 }
 0x1bf   : > { %2426 = vmatprep.subr.bf16.mxu0 %v3310_v20 }
 0x1c1   : > { %2388 = vmatmul.mubr.bf16.gmra.mrb[60].mxu0 %v4099_v5 }
 0x1c2   : > { %2427 = vmatpush1.bf16.msra.mxu0 %v3308_v3  ;;  %2430 = vmatprep.mubr.bf16.mxu0 %v4238_v45 }
 0x1c3   : > { %2428 = vmatprep.subr.bf16.mxu0 %v3313_v8 }
 0x1c6   : > { %2429 = vmatpush1.bf16.msra.mxu0 %v3311_v17 }
 0x1c9   : > { %2431 = vmatmul.mubr.bf16.vlgmr.msra.gmra.mrb[32].mxu0 %v4233_v42 }
 0x1ca   : > { %2440 = vmatprep.mubr.bf16.mxu0 %v4260_v10 }
 0x1d1   : > { %2441 = vmatmul.mubr.bf16.gmra.mrb[36].mxu0 %v4255_v2 }
 0x1d2   : > { %2450 = vmatprep.mubr.bf16.mxu0 %v4282_v6 }
 0x1d9   : > { %2451 = vmatmul.mubr.bf16.gmra.mrb[40].mxu0 %v4277_v31 }
 0x1da   : > { %2460 = vmatprep.mubr.bf16.mxu0 %v4304_v55 }
 0x1dc   : > { %v2093_v5 = vpop.f32.mrb[96].mxu1 }
 0x1dd   : > { %v2095_v52 = vpop.f32.mrb[97].mxu1  ;;  %v2094_v53 = vadd.f32 %v2093_v5, %v4466_v60 }
 0x1de   : > { %v2097_v54 = vpop.f32.mrb[98].mxu1  ;;  %v2096_v9 = vadd.f32 %v2095_v52, %v4470_v56 }
 0x1df   : > { %v2099_v26 = vpop.f32.mrb[99].mxu1 }
 0x1e0   : > { %v2100_v4 = vadd.f32 %v2099_v26, %v4470_v56 }
 0x1e1   : > { %2461 = vmatmul.mubr.bf16.gmra.mrb[44].mxu0 %v4299_v41 }
 0x1e2   : > { %2470 = vmatprep.mubr.bf16.mxu0 %v4326_v16 }
 0x1e4   : > { %v2103_v45 = vpop.f32.mrb[100].mxu1 }
 0x1e5   : > { %v2105_v42 = vpop.f32.mrb[101].mxu1  ;;  %v2104_v58 = vadd.f32 %v2103_v45, %v4466_v60 }
 0x1e6   : > { %v4404_v27 = vpop.f32.mrb[102].mxu1  ;;  %v2106_v14 = vadd.f32 %v2105_v42, %v4470_v56 }
 0x1e7   : > { %v4406_v10 = vpop.f32.mrb[103].mxu1  ;;  %v2108_v34 = vadd.f32 %v4404_v27, %v4466_v60 }
 0x1e8   : > { %v2110_v44 = vadd.f32 %v4406_v10, %v4470_v56 }
 0x1e9   : > { %2471 = vmatmul.mubr.bf16.gmra.mrb[48].mxu0 %v4321_v15 }
 0x1ea   : > { %2480 = vmatprep.mubr.bf16.mxu0 %v4348_v38 }
 0x1ec   : > { %v4410_v2 = vpop.f32.mrb[104].mxu1 }
 0x1ed   : > { %v4412_v31 = vpop.f32.mrb[105].mxu1  ;;  %v2114_v26 = vadd.f32 %v4410_v2, %v4466_v60 }
 0x1ee   : > { %v4414_v6 = vpop.f32.mrb[106].mxu1  ;;  %v2116_v45 = vadd.f32 %v4412_v31, %v4470_v56 }
 0x1ef   : > { %v4416_v55 = vpop.f32.mrb[107].mxu1  ;;  %v2118_v27 = vadd.f32 %v4414_v6, %v4466_v60 }
 0x1f1   : > { %2481 = vmatmul.mubr.bf16.gmra.mrb[52].mxu0 %v4343_v36 }
 0x1f2   : > { %2490 = vmatprep.mubr.bf16.mxu0 %v1270_v0 }
 0x1f4   : > { %v4419_v41 = vpop.f32.mrb[108].mxu1 }
 0x1f5   : > { %v4421_v16 = vpop.f32.mrb[109].mxu1  ;;  %v2124_v6 = vadd.f32 %v4419_v41, %v4466_v60 }
 0x1f6   : > { %v4423_v25 = vpop.f32.mrb[110].mxu1 }
 0x1f7   : > { %v4425_v15 = vpop.f32.mrb[111].mxu1 }
 0x1f9   : > { %2491 = vmatmul.mubr.bf16.gmra.mrb[56].mxu0 %v4365_v61  ;;  %v2098_v61 = vadd.f32 %v2097_v54, %v4466_v60 }
 0x1fa   : > { %2500 = vmatprep.mubr.bf16.mxu0 %v1278_v50 }
 0x1fc   : > { %v4428_v28 = vpop.f32.mrb[112].mxu1 }
 0x1fd   : > { %v4430_v35 = vpop.f32.mrb[113].mxu1 }
 0x1fe   : > { %v4432_v7 = vpop.f32.mrb[114].mxu1 }
 0x1ff   : > { %v4434_v33 = vpop.f32.mrb[115].mxu1 }
 0x201   : > { %2501 = vmatmul.mubr.bf16.gmra.mrb[60].mxu0 %v1277_v23 }
 0x204   : > { %v4436_v36 = vpop.f32.mrb[116].mxu1 }
 0x205   : > { %v4438_v37 = vpop.f32.mrb[117].mxu1 }
 0x206   : > { %v4440_v38 = vpop.f32.mrb[118].mxu1 }
 0x207   : > { %v4442_v12 = vpop.f32.mrb[119].mxu1 }
 0x20c   : > { %v4444_v39 = vpop.f32.mrb[120].mxu1 }
 0x20d   : > { %v4446_v40 = vpop.f32.mrb[121].mxu1 }
 0x20e   : > { %v4448_v43 = vpop.f32.mrb[122].mxu1 }
 0x20f   : > { %v4450_v24 = vpop.f32.mrb[123].mxu1 }
 0x214   : > { %v4452_v46 = vpop.f32.mrb[124].mxu1 }
 0x215   : > { %v4454_v48 = vpop.f32.mrb[125].mxu1 }
 0x216   : > { %v4456_v22 = vpop.f32.mrb[126].mxu1 }
 0x217   : > { %v4458_v49 = vpop.f32.mrb[127].mxu1 }
 0x29c   : > { %v2432_v59 = vpop.f32.mrb[32].mxu0 }
 0x29d   : > { %v2913_v62 = vadd.f32 %v2432_v59, %v2094_v53  ;;  %v2434_v0 = vpop.f32.mrb[33].mxu0  ;;  %v2120_v53 = vadd.f32 %v4416_v55, %v4470_v56 }
 0x29e   : > { %v2915_v30 = vadd.f32 %v2434_v0, %v2096_v9  ;;  %v2436_v47 = vpop.f32.mrb[34].mxu0 }
 0x29f   : > { %v2511_v1 = vmax.f32 %v2913_v62, 0.0  ;;  %v2917_v29 = vadd.f32 %v2436_v47, %v2098_v61  ;;  %v2438_v32 = vpop.f32.mrb[35].mxu0  ;;  %v2126_v47 = vadd.f32 %v4421_v16, %v4470_v56 }
 0x2a0   : > { %v2512_v63 = vmax.f32 %v2915_v30, 0.0  ;;  %v2919_v57 = vadd.f32 %v2438_v32, %v2100_v4 }
 0x2a1   : > { %2543 = vst [vmem:[%s4479_s13] sm:$0xff] %v2511_v1  ;;  %v2513_v11 = vmax.f32 %v2917_v29, 0.0  ;;  %v2128_v1 = vadd.f32 %v4423_v25, %v4466_v60  ;;  %v2134_v25 = vadd.f32 %v4428_v28, %v4466_v60 }
 0x2a2   : > { %2544 = vst [vmem:[%s4479_s13 + $0x8] sm:$0xff] %v2512_v63  ;;  %v2514_v13 = vmax.f32 %v2919_v57, 0.0  ;;  %v2130_v63 = vadd.f32 %v4425_v15, %v4470_v56 }
 0x2a3   : > { %2545 = vst [vmem:[%s4479_s13 + $0x10] sm:$0xff] %v2513_v11 }
 0x2a4   : > { %2546 = vst [vmem:[%s4479_s13 + $0x18] sm:$0xff] %v2514_v13  ;;  %v2442_v18 = vpop.f32.mrb[36].mxu0 }
 0x2a5   : > { %v2921_v19 = vadd.f32 %v2442_v18, %v2104_v58  ;;  %v2444_v20 = vpop.f32.mrb[37].mxu0 }
 0x2a6   : > { %v2923_v21 = vadd.f32 %v2444_v20, %v2106_v14  ;;  %v2446_v23 = vpop.f32.mrb[38].mxu0  ;;  %v2138_v20 = vadd.f32 %v4432_v7, %v4466_v60  ;;  %v2144_v7 = vadd.f32 %v4436_v36, %v4466_v60 }
 0x2a7   : > { %v2515_v3 = vmax.f32 %v2921_v19, 0.0  ;;  %v2925_v50 = vadd.f32 %v2446_v23, %v2108_v34  ;;  %v2448_v8 = vpop.f32.mrb[39].mxu0  ;;  %v2136_v19 = vadd.f32 %v4430_v35, %v4470_v56  ;;  %v2140_v23 = vadd.f32 %v4434_v33, %v4470_v56 }
 0x2a8   : > { %v2516_v17 = vmax.f32 %v2923_v21, 0.0  ;;  %v2927_v5 = vadd.f32 %v2448_v8, %v2110_v44 }
 0x2a9   : > { %2547 = vst [vmem:[%s4479_s13 + $0x20] sm:$0xff] %v2515_v3  ;;  %v2517_v52 = vmax.f32 %v2925_v50, 0.0 }
 0x2aa   : > { %2548 = vst [vmem:[%s4479_s13 + $0x28] sm:$0xff] %v2516_v17  ;;  %v2518_v54 = vmax.f32 %v2927_v5, 0.0 }
 0x2ab   : > { %2549 = vst [vmem:[%s4479_s13 + $0x30] sm:$0xff] %v2517_v52 }
 0x2ac   : > { %2550 = vst [vmem:[%s4479_s13 + $0x38] sm:$0xff] %v2518_v54  ;;  %v2452_v42 = vpop.f32.mrb[40].mxu0 }
 0x2ad   : > { %v2929_v10 = vadd.f32 %v2452_v42, %v2114_v26  ;;  %v2454_v51 = vpop.f32.mrb[41].mxu0  ;;  %v2146_v26 = vadd.f32 %v4438_v37, %v4470_v56 }
 0x2ae   : > { %v2931_v9 = vadd.f32 %v2454_v51, %v2116_v45  ;;  %v2456_v2 = vpop.f32.mrb[42].mxu0  ;;  %v2148_v45 = vadd.f32 %v4440_v38, %v4466_v60  ;;  %v2154_v38 = vadd.f32 %v4444_v39, %v4466_v60 }
 0x2af   : > { %v2519_v59 = vmax.f32 %v2929_v10, 0.0  ;;  %v2933_v61 = vadd.f32 %v2456_v2, %v2118_v27  ;;  %v2458_v62 = vpop.f32.mrb[43].mxu0  ;;  %v2150_v10 = vadd.f32 %v4442_v12, %v4470_v56  ;;  %v2156_v12 = vadd.f32 %v4446_v40, %v4470_v56 }
 0x2b0   : > { %v2520_v0 = vmax.f32 %v2931_v9, 0.0  ;;  %v2935_v31 = vadd.f32 %v2458_v62, %v2120_v53 }
 0x2b1   : > { %2551 = vst [vmem:[%s4479_s13 + $0x40] sm:$0xff] %v2519_v59  ;;  %v2521_v4 = vmax.f32 %v2933_v61, 0.0 }
 0x2b2   : > { %2552 = vst [vmem:[%s4479_s13 + $0x48] sm:$0xff] %v2520_v0  ;;  %v2522_v30 = vmax.f32 %v2935_v31, 0.0  ;;  %v2158_v31 = vadd.f32 %v4448_v43, %v4466_v60 }
 0x2b3   : > { %2553 = vst [vmem:[%s4479_s13 + $0x50] sm:$0xff] %v2521_v4 }
 0x2b4   : > { %2554 = vst [vmem:[%s4479_s13 + $0x58] sm:$0xff] %v2522_v30  ;;  %v2462_v55 = vpop.f32.mrb[44].mxu0 }
 0x2b5   : > { %v2937_v29 = vadd.f32 %v2462_v55, %v2124_v6  ;;  %v2464_v32 = vpop.f32.mrb[45].mxu0  ;;  %v2160_v6 = vadd.f32 %v4450_v24, %v4470_v56  ;;  %v2166_v24 = vadd.f32 %v4454_v48, %v4470_v56 }
 0x2b6   : > { %v2939_v57 = vadd.f32 %v2464_v32, %v2126_v47  ;;  %v2466_v41 = vpop.f32.mrb[46].mxu0 }
 0x2b7   : > { %v2523_v11 = vmax.f32 %v2937_v29, 0.0  ;;  %v2941_v13 = vadd.f32 %v2466_v41, %v2128_v1  ;;  %v2468_v58 = vpop.f32.mrb[47].mxu0 }
 0x2b8   : > { %v2524_v14 = vmax.f32 %v2939_v57, 0.0  ;;  %v2943_v16 = vadd.f32 %v2468_v58, %v2130_v63  ;;  %v2164_v57 = vadd.f32 %v4452_v46, %v4466_v60 }
 0x2b9   : > { %2555 = vst [vmem:[%s4479_s13 + $0x60] sm:$0xff] %v2523_v11  ;;  %v2525_v18 = vmax.f32 %v2941_v13, 0.0  ;;  %v2168_v11 = vadd.f32 %v4456_v22, %v4466_v60 }
 0x2ba   : > { %2556 = vst [vmem:[%s4479_s13 + $0x68] sm:$0xff] %v2524_v14  ;;  %v2526_v34 = vmax.f32 %v2943_v16, 0.0  ;;  %v2170_v14 = vadd.f32 %v4458_v49, %v4470_v56 }
 0x2bb   : > { %2557 = vst [vmem:[%s4479_s13 + $0x70] sm:$0xff] %v2525_v18 }
 0x2bc   : > { %2558 = vst [vmem:[%s4479_s13 + $0x78] sm:$0xff] %v2526_v34  ;;  %v2472_v15 = vpop.f32.mrb[48].mxu0 }
 0x2bd   : > { %v2945_v44 = vadd.f32 %v2472_v15, %v2134_v25  ;;  %v2474_v21 = vpop.f32.mrb[49].mxu0 }
 0x2be   : > { %v2947_v3 = vadd.f32 %v2474_v21, %v2136_v19  ;;  %v2476_v28 = vpop.f32.mrb[50].mxu0 }
 0x2bf   : > { %v2527_v50 = vmax.f32 %v2945_v44, 0.0  ;;  %v2949_v8 = vadd.f32 %v2476_v28, %v2138_v20  ;;  %v2478_v17 = vpop.f32.mrb[51].mxu0 }
 0x2c0   : > { %v2528_v5 = vmax.f32 %v2947_v3, 0.0  ;;  %v2951_v35 = vadd.f32 %v2478_v17, %v2140_v23 }
 0x2c1   : > { %2559 = vst [vmem:[%s4479_s13 + $0x80] sm:$0xff] %v2527_v50  ;;  %v2529_v52 = vmax.f32 %v2949_v8, 0.0 }
 0x2c2   : > { %2560 = vst [vmem:[%s4479_s13 + $0x88] sm:$0xff] %v2528_v5  ;;  %v2530_v54 = vmax.f32 %v2951_v35, 0.0 }
 0x2c3   : > { %2561 = vst [vmem:[%s4479_s13 + $0x90] sm:$0xff] %v2529_v52 }
 0x2c4   : > { %2562 = vst [vmem:[%s4479_s13 + $0x98] sm:$0xff] %v2530_v54  ;;  %v2482_v33 = vpop.f32.mrb[52].mxu0 }
 0x2c5   : > { %v2953_v42 = vadd.f32 %v2482_v33, %v2144_v7  ;;  %v2484_v27 = vpop.f32.mrb[53].mxu0 }
 0x2c6   : > { %v2955_v51 = vadd.f32 %v2484_v27, %v2146_v26  ;;  %v2486_v36 = vpop.f32.mrb[54].mxu0 }
 0x2c7   : > { %v2531_v53 = vmax.f32 %v2953_v42, 0.0  ;;  %v2957_v9 = vadd.f32 %v2486_v36, %v2148_v45  ;;  %v2488_v2 = vpop.f32.mrb[55].mxu0 }
 0x2c8   : > { %v2532_v59 = vmax.f32 %v2955_v51, 0.0  ;;  %v2959_v37 = vadd.f32 %v2488_v2, %v2150_v10 }
 0x2c9   : > { %2563 = vst [vmem:[%s4479_s13 + $0xa0] sm:$0xff] %v2531_v53  ;;  %v2533_v61 = vmax.f32 %v2957_v9, 0.0 }
 0x2ca   : > { %2564 = vst [vmem:[%s4479_s13 + $0xa8] sm:$0xff] %v2532_v59  ;;  %v2534_v62 = vmax.f32 %v2959_v37, 0.0 }
 0x2cb   : > { %2565 = vst [vmem:[%s4479_s13 + $0xb0] sm:$0xff] %v2533_v61 }
 0x2cc   : > { %2566 = vst [vmem:[%s4479_s13 + $0xb8] sm:$0xff] %v2534_v62  ;;  %v2492_v0 = vpop.f32.mrb[56].mxu0 }
 0x2cd   : > { %v2961_v4 = vadd.f32 %v2492_v0, %v2154_v38  ;;  %v2494_v30 = vpop.f32.mrb[57].mxu0 }
 0x2ce   : > { %v2963_v39 = vadd.f32 %v2494_v30, %v2156_v12  ;;  %v2496_v47 = vpop.f32.mrb[58].mxu0 }
 0x2cf   : > { %v2535_v55 = vmax.f32 %v2961_v4, 0.0  ;;  %v2965_v1 = vadd.f32 %v2496_v47, %v2158_v31  ;;  %v2498_v29 = vpop.f32.mrb[59].mxu0 }
 0x2d0   : > { %v2536_v40 = vmax.f32 %v2963_v39, 0.0  ;;  %v2967_v32 = vadd.f32 %v2498_v29, %v2160_v6 }
 0x2d1   : > { %2567 = vst [vmem:[%s4479_s13 + $0xc0] sm:$0xff] %v2535_v55  ;;  %v2537_v63 = vmax.f32 %v2965_v1, 0.0 }
 0x2d2   : > { %2568 = vst [vmem:[%s4479_s13 + $0xc8] sm:$0xff] %v2536_v40  ;;  %v2538_v43 = vmax.f32 %v2967_v32, 0.0 }
 0x2d3   : > { %2569 = vst [vmem:[%s4479_s13 + $0xd0] sm:$0xff] %v2537_v63 }
 0x2d4   : > { %2570 = vst [vmem:[%s4479_s13 + $0xd8] sm:$0xff] %v2538_v43  ;;  %v2502_v41 = vpop.f32.mrb[60].mxu0 }
 0x2d5   : > { %v2969_v13 = vadd.f32 %v2502_v41, %v2164_v57  ;;  %v2504_v58 = vpop.f32.mrb[61].mxu0 }
 0x2d6   : > { %v2971_v16 = vadd.f32 %v2504_v58, %v2166_v24  ;;  %v2506_v46 = vpop.f32.mrb[62].mxu0 }
 0x2d7   : > { %v2539_v48 = vmax.f32 %v2969_v13, 0.0  ;;  %v2973_v18 = vadd.f32 %v2506_v46, %v2168_v11  ;;  %v2508_v34 = vpop.f32.mrb[63].mxu0 }
 0x2d8   : > { %v2540_v25 = vmax.f32 %v2971_v16, 0.0  ;;  %v2975_v19 = vadd.f32 %v2508_v34, %v2170_v14 }
 0x2d9   : > { %2571 = vst [vmem:[%s4479_s13 + $0xe0] sm:$0xff] %v2539_v48  ;;  %v2541_v22 = vmax.f32 %v2973_v18, 0.0 }
 0x2da   : > { %2572 = vst [vmem:[%s4479_s13 + $0xe8] sm:$0xff] %v2540_v25  ;;  %v2542_v49 = vmax.f32 %v2975_v19, 0.0 }
 0x2db   : > { %2573 = vst [vmem:[%s4479_s13 + $0xf0] sm:$0xff] %v2541_v22 }
 0x2dc   : > { %2574 = vst [vmem:[%s4479_s13 + $0xf8] sm:$0xff] %v2542_v49 }
 0x2dd   : > { %3327 = shalt.err (!%p3324_p7)
}
 0x2de   : > { %s3328_s17 = scalar_lea.hbm %s4570_s9, 4096  ;;  %s3332_s13 = scalar_lea.hbm %s4636_s5, 16384 }
 0x2df   : > { %p3329_p9 = scmp.ne.s32.totalorder %s4570_s9, %s3328_s17  ;;  %p3333_p12 = scmp.lt.u32.totalorder %s4570_s9, %s4636_s5 }
 0x2e0   : > { %p3334_p13 = scmp.lt.u32.totalorder %s3332_s13, %s3328_s17  ;;  %p3336_p1 = scmp.lt.u32.totalorder %s3328_s17, %s4570_s9 }
 0x2e1   : > { %p3330_p10 = pnand %p3329_p9, %p3495_p3 }
 0x2e2   : > { %p3335_p0 = por %p3334_p13, %p3333_p12 }
 0x2e3   : > { %p3331_p11 = pneg %p3330_p10 }
 0x2e4   : > { %p3337_p2 = por %p3336_p1, %p3335_p0 }
 0x2e6   : > { %p3338_p4 = pnand %p3337_p2, %p3331_p11 }
 0x2e8   : > { %3341 = shalt.err (!%p3338_p4)
}
 0x2e9   : > { %s3412_s30 = smov 256   ;;  %s3413_s21 = smov 16  }
 0x2ea   : > { %3040 = dma.vmem_to_hbm [thread:$0]  (%p3495_p3), %s4572_s22, 4096, %s4570_s9, %s4579_s10, %s3412_s30, %s3412_s30, %s3413_s21  }
 0x2eb PF: > { %p3046_p5 = scmp.ge.s32.totalorder %s3408_s25, 2  ;;  %s2607_s8 = sand.u32 1, %s3380_s18  }
 0x2ec   : > { %s2608_s28 = scalar_lea.sflag [#allocation3], %s2607_s8 }
 0x2ed   : > { %p3043_p6 = pnand %p3046_p5, %p3504_p8 }
 0x2ef   : > { %3375 = dma.done.wait (!%p3043_p6), %s2608_s28, 4096  }
 0x2f0   : > { %3377 = vsyncadd (!%p3043_p6), %s2608_s28, 4294963200  ;;  %s18_s25 = sadd.s32 1, %s3408_s25   ;;  %s4645_s22 = sld [smem:[#allocation5_spill]] }
 0x2f1   : > { %p15_p7 = scmp.ge.s32.totalorder %s18_s25, 6   ;;  %s4646_s6 = sld [smem:[#allocation6_spill]] }
 0x2f2   : > { %s4647_s24 = sld [smem:[#allocation7_spill]]  ;;  %s4648_s18 = smov %s3384_s19 }
 0x2f3   : > { %s4649_s19 = smov %s3388_s20  ;;  %s4650_s20 = smov %s3513_s11 }
 0x2f4   : > { %s4651_s21 = smov %s3400_s23  ;;  %17 = sbr.rel (!%p15_p7) target bundleno = 5 (0x5), region = 78 }
 0x2f7   : > { %s4652_s23 = smov %s4646_s6 }
 0x2fb   :  { %2613 = vsyncpa [#allocation3], 1 }
 0x2fc   :  { %2615 = vsyncpa [#allocation3 + $0x1], 1 }

</bundles_post_ra>
